<compile_context>
chip_gen: v6e
topology: v6e:2x2x1
jax: 0.10.0
libtpu: 0.0.40
codegen_flags: <defaults>
</compile_context>

<pallas_src>
import functools

import jax
import jax.numpy as jnp
from jax.experimental import pallas as pl
from jax.experimental.pallas import tpu as pltpu

EPS = 1e-5  # torch.nn.InstanceNorm2d default eps


# --------------------------------------------------------------------------- #
# Reflection padding into a reused VMEM scratch (no concatenates).
# --------------------------------------------------------------------------- #
def _reflect_pad_flat(dst_ref, z, channels, pad):
    """Reflection-pad a (H, W*C) tile into a (H+2p, (W+2p)*C) VMEM scratch."""
    H, WC = z.shape
    W = WC // channels
    c0 = pad * channels
    dst_ref[pad:pad + H, c0:c0 + WC] = z                                  # interior
    for k in range(1, pad + 1):                                           # rows
        dst_ref[pad - k:pad - k + 1, c0:c0 + WC] = z[k:k + 1]
        dst_ref[pad + H - 1 + k:pad + H + k, c0:c0 + WC] = z[H - 1 - k:H - k]
    for k in range(1, pad + 1):                     # pixel columns (incl. corners)
        dst_ref[:, (pad - k) * channels:(pad - k + 1) * channels] = \
            dst_ref[:, (pad + k) * channels:(pad + k + 1) * channels]
        dst_ref[:, (pad + W - 1 + k) * channels:(pad + W + k) * channels] = \
            dst_ref[:, (pad + W - 1 - k) * channels:(pad + W - k) * channels]


def _reflect_pad_hwc(dst_ref, z, pad):
    """Reflection-pad a (H, W, C) tile into a (H+2p, W+2p, C) VMEM scratch."""
    H, W = z.shape[0], z.shape[1]
    dst_ref[pad:pad + H, pad:pad + W, :] = z
    for k in range(1, pad + 1):
        dst_ref[pad - k:pad - k + 1, pad:pad + W, :] = z[k:k + 1]
        dst_ref[pad + H - 1 + k:pad + H + k, pad:pad + W, :] = z[H - 1 - k:H - k]
    for k in range(1, pad + 1):
        dst_ref[:, pad - k:pad - k + 1, :] = dst_ref[:, pad + k:pad + k + 1, :]
        dst_ref[:, pad + W - 1 + k:pad + W + k, :] = \
            dst_ref[:, pad + W - 1 - k:pad + W - k, :]


# --------------------------------------------------------------------------- #
# InstanceNorm (affine=False), mean-shifted two-pass variance, f32 stats.
# --------------------------------------------------------------------------- #
def _instance_norm_rows(y):
    """IN of a (H*W, C) value; per-channel stats over the row axis."""
    inv_n = 1.0 / y.shape[0]
    mean = jnp.sum(y, axis=0, keepdims=True) * inv_n
    d = y - mean
    var = jnp.sum(d * d, axis=0, keepdims=True) * inv_n
    return d * jax.lax.rsqrt(var + EPS)


def _instance_norm_flat(y, channels):
    """IN of a (H, W*C) tile where the channel of lane p is p % C.
    Channel fold + broadcast-back are done with tiny one-hot matmuls so the
    tile never leaves the lane-dense flat layout (no (H,W,C) relayout)."""
    H, WC = y.shape
    inv_n = 1.0 / (H * (WC // channels))
    sel = (jax.lax.broadcasted_iota(jnp.int32, (WC, channels), 0) % channels ==
           jax.lax.broadcasted_iota(jnp.int32, (WC, channels), 1)
           ).astype(jnp.float32)                                # (W*C, C) one-hot
    sel_t = (jax.lax.broadcasted_iota(jnp.int32, (channels, WC), 1) % channels ==
             jax.lax.broadcasted_iota(jnp.int32, (channels, WC), 0)
             ).astype(jnp.float32)                              # (C, W*C) one-hot

    def fold(v):  # per-lane total over all pixels of that lane's channel
        per_row = jnp.dot(v, sel, preferred_element_type=jnp.float32)      # (H, C)
        per_lane = jnp.dot(per_row, sel_t, preferred_element_type=jnp.float32)
        return jnp.sum(per_lane, axis=0, keepdims=True)                    # (1, WC)

    mean = fold(y) * inv_n
    d = y - mean
    var = fold(d * d) * inv_n
    return d * jax.lax.rsqrt(var + EPS)


# --------------------------------------------------------------------------- #
# Convolutions (bias-free: the bias is cancelled by the IN mean subtraction).
# --------------------------------------------------------------------------- #
def _conv_banded(padbuf, wb_ref, H, ksize, mxu_dtype):
    """Small-C path: ksize matmuls of the flattened padded row block against
    precomputed banded weight matrices.  padbuf: (H+2p, (W+2p)*C) f32 scratch;
    wb_ref: (ksize, (W+2p)*C, W*C).  Returns (H, W*C) f32."""
    acc = jnp.dot(padbuf[0:H, :].astype(mxu_dtype), wb_ref[0],
                  preferred_element_type=jnp.float32)
    for kh in range(1, ksize):
        acc = acc + jnp.dot(padbuf[kh:kh + H, :].astype(mxu_dtype), wb_ref[kh],
                            preferred_element_type=jnp.float32)
    return acc


def _conv_taps(padbuf, w_ref, acc_ref, H, W, ksize, mxu_dtype):
    """Large-C path: per-tap (H*W, Cin) x (Cin, Cout) matmuls accumulated into a
    persistent f32 VMEM scratch.  The first tap initialises the accumulator.
    The (H,W,Cin)->(H*W,Cin) view is layout-preserving when W % 8 == 0."""
    HW = H * W
    cin = padbuf.shape[-1]
    first = True
    for kh in range(ksize):
        for kw in range(ksize):
            win = padbuf[kh:kh + H, kw:kw + W, :].reshape(HW, cin).astype(mxu_dtype)
            t = jnp.dot(win, w_ref[kh, kw], preferred_element_type=jnp.float32)
            if first:
                acc_ref[...] = t
                first = False
            else:
                acc_ref[...] += t


# --------------------------------------------------------------------------- #
# Fused kernels (one batch element per grid step, everything VMEM-resident).
# --------------------------------------------------------------------------- #
def _resblock_kernel_flat(x_ref, wb1_ref, wb2_ref, o_ref, padbuf,
                          *, channels, pad, ksize, mxu_dtype):
    x = x_ref[...]                                   # (H, W*C) f32, lane-dense
    H = x.shape[0]
    _reflect_pad_flat(padbuf, x, channels, pad)
    h = jnp.maximum(_instance_norm_flat(
        _conv_banded(padbuf, wb1_ref, H, ksize, mxu_dtype), channels), 0.0)
    _reflect_pad_flat(padbuf, h, channels, pad)
    y = _instance_norm_flat(
        _conv_banded(padbuf, wb2_ref, H, ksize, mxu_dtype), channels)
    o_ref[...] = (x + y).astype(o_ref.dtype)


def _resblock_kernel_taps(x_ref, w1_ref, w2_ref, o_ref, padbuf, acc_ref,
                          *, pad, ksize, mxu_dtype):
    x = x_ref[...]                                   # (H, W, C) f32
    H, W, C = x.shape
    _reflect_pad_hwc(padbuf, x, pad)
    _conv_taps(padbuf, w1_ref, acc_ref, H, W, ksize, mxu_dtype)
    h = jnp.maximum(_instance_norm_rows(acc_ref[...]), 0.0).reshape(H, W, C)
    _reflect_pad_hwc(padbuf, h, pad)
    _conv_taps(padbuf, w2_ref, acc_ref, H, W, ksize, mxu_dtype)
    y = _instance_norm_rows(acc_ref[...]).reshape(H, W, C)
    o_ref[...] = (x + y).astype(o_ref.dtype)


# --------------------------------------------------------------------------- #
# Wrapper.
# --------------------------------------------------------------------------- #
def _banded_weights(w_hwio, out_w, pad):
    """(KH,KW,Cin,Cout) -> (KH, (out_w+2p)*Cin, out_w*Cout) banded matrices so a
    VALID conv over the flattened (W*C) lane axis becomes KH matmuls."""
    KH, KW, Cin, Cout = w_hwio.shape
    Wp = out_w + 2 * pad
    p = jnp.arange(Wp * Cin)
    q = jnp.arange(out_w * Cout)
    kw = p[:, None] // Cin - q[None, :] // Cout                 # (P, Q)
    valid = (kw >= 0) & (kw < KW)
    kw_c = jnp.clip(kw, 0, KW - 1)
    cin = jnp.broadcast_to((p % Cin)[:, None], kw.shape)
    cout = jnp.broadcast_to((q % Cout)[None, :], kw.shape)
    gat = w_hwio[:, kw_c, cin, cout]                            # (KH, P, Q)
    return jnp.where(valid[None], gat, 0.0)


def _vmem_capacity_bytes():
    try:
        cap = getattr(pltpu.get_tpu_info(), "vmem_capacity_bytes", None)
        if cap:
            return int(cap)
    except Exception:
        pass
    return 64 * 2 ** 20    # conservative fallback (v7x-sized VMEM)


def _weight_spec(shape, single_buffer):
    """Constant-index weight spec; single-buffered when supported (the block
    never changes across the grid, so double buffering is pure VMEM waste)."""
    index_map = lambda n: (0,) * len(shape)
    if single_buffer:
        return pl.BlockSpec(shape, index_map,
                            pipeline_mode=pl.Buffered(buffer_count=1))
    return pl.BlockSpec(shape, index_map)


def resnet_block_forward(x_nchw, w1, b1, w2, b2, pad=1,
                         mxu_dtype=jnp.bfloat16, force_path=None):
    """ResNetBlock forward.  x_nchw: (N, C, H, W); w*: HWIO (KH, KW, Cin, Cout).

    b1/b2 are accepted for API parity with the PyTorch module but intentionally
    unused: a conv bias is constant over the spatial dims, so the immediately
    following InstanceNorm2d (affine=False) mean subtraction cancels it exactly.
    (Would NOT hold for affine=True or anything inserted between conv and IN.)
    """
    del b1, b2
    x = jnp.transpose(x_nchw, (0, 2, 3, 1)).astype(jnp.float32)    # NCHW -> NHWC
    N, H, W, C = x.shape
    KH, KW, Cin, Cout = w1.shape
    assert Cin == C and Cout == C and w2.shape == w1.shape
    assert KH == KW and 2 * pad == KH - 1, "residual add needs 2*pad == k-1"

    Hp, Wp = H + 2 * pad, W + 2 * pad
    itemsize = jnp.dtype(mxu_dtype).itemsize

    if force_path is None:
        # Lane-dense flat path only while the banded weights stay tiny.
        use_flat = (C <= 32) and (KH * (Wp * C) * (W * C) <= (1 << 19))
    else:
        use_flat = force_path == "flat"

    if use_flat:
        x_in = x.reshape(N, H, W * C)
        wb1 = _banded_weights(w1.astype(jnp.float32), W, pad).astype(mxu_dtype)
        wb2 = _banded_weights(w2.astype(jnp.float32), W, pad).astype(mxu_dtype)
        kernel = functools.partial(_resblock_kernel_flat, channels=C, pad=pad,
                                   ksize=KH, mxu_dtype=mxu_dtype)
        io_spec = pl.BlockSpec((pl.Squeezed(), H, W * C), lambda n: (n, 0, 0))
        w_shape = (KH, Wp * C, W * C)
        scratch = [pltpu.VMEM((Hp, Wp * C), jnp.float32)]
        w_args = (wb1, wb2)
        out_shape = jax.ShapeDtypeStruct((N, H, W * C), jnp.float32)
        flops = N * 2 * (2 * H * (Wp * C) * (W * C) * KH)
        vmem_est = (4 * 4 * H * W * C                     # in/out blocks, 2x buffered
                    + 4 * Hp * Wp * C                     # padded scratch (f32)
                    + 2 * itemsize * KH * Wp * C * W * C  # two banded weights
                    + 4 * 4 * H * W * C)                  # live temporaries headroom
    else:
        x_in = x
        w_args = (w1.astype(mxu_dtype), w2.astype(mxu_dtype))
        kernel = functools.partial(_resblock_kernel_taps, pad=pad, ksize=KH,
                                   mxu_dtype=mxu_dtype)
        io_spec = pl.BlockSpec((pl.Squeezed(), H, W, C), lambda n: (n, 0, 0, 0))
        w_shape = (KH, KW, C, C)
        scratch = [pltpu.VMEM((Hp, Wp, C), jnp.float32),
                   pltpu.VMEM((H * W, C), jnp.float32)]
        out_shape = jax.ShapeDtypeStruct((N, H, W, C), jnp.float32)
        flops = N * 2 * (2 * H * W * KH * KW * C * C)
        vmem_est = (4 * 4 * H * W * C
                    + 4 * Hp * Wp * C                     # padded scratch (f32)
                    + 4 * H * W * C                       # f32 accumulator scratch
                    + 2 * itemsize * KH * KW * C * C
                    + 4 * 4 * H * W * C)

    vmem_cap = _vmem_capacity_bytes()
    if vmem_est > int(0.85 * vmem_cap):
        raise NotImplementedError(
            "TODO(synk): frame working set (%d B) exceeds ~85%% of VMEM (%d B); "
            "needs H-row tiling with a 2-row halo and a two-pass InstanceNorm."
            % (vmem_est, vmem_cap))
    vmem_limit = int(min(max(4 * vmem_est, 32 * 2 ** 20), 0.85 * vmem_cap))

    w_bytes = itemsize * (int(w_args[0].size) + int(w_args[1].size))
    cost = pl.CostEstimate(flops=int(flops), transcendentals=int(4 * N * C),
                           bytes_accessed=int(4 * 2 * N * H * W * C + w_bytes))

    def _call(single_buffer_weights):
        w_spec = _weight_spec(w_shape, single_buffer_weights)
        return pl.pallas_call(
            kernel,
            grid=(N,),
            in_specs=[io_spec, w_spec, w_spec],
            out_specs=io_spec,
            out_shape=out_shape,
            scratch_shapes=scratch,
            compiler_params=pltpu.CompilerParams(
                dimension_semantics=("parallel",),
                vmem_limit_bytes=vmem_limit),
            cost_estimate=cost,
        )(x_in, *w_args)

    try:
        out = _call(True)
    except Exception:
        # pipeline_mode / single-buffered weights unsupported on this JAX build.
        out = _call(False)

    if use_flat:
        out = out.reshape(N, H, W, C)
    return jnp.transpose(out, (0, 3, 1, 2))                      # NHWC -> NCHW


# --------------------------------------------------------------------------- #
# Pure-JAX reference matching the PyTorch module (biases applied).
# --------------------------------------------------------------------------- #
def _reference_forward(x_nchw, w1, b1, w2, b2, pad=1):
    x = jnp.transpose(x_nchw, (0, 2, 3, 1)).astype(jnp.float32)

    def conv(z, w, b):
        zp = jnp.pad(z, ((0, 0), (pad, pad), (pad, pad), (0, 0)), mode="reflect")
        y = jax.lax.conv_general_dilated(
            zp, w, window_strides=(1, 1), padding="VALID",
            dimension_numbers=("NHWC", "HWIO", "NHWC"),
            precision=jax.lax.Precision.HIGHEST)
        return y + b.reshape(1, 1, 1, -1)

    def inorm(y):
        m = jnp.mean(y, axis=(1, 2), keepdims=True)
        v = jnp.mean((y - m) ** 2, axis=(1, 2), keepdims=True)
        return (y - m) * jax.lax.rsqrt(v + EPS)

    h = jnp.maximum(inorm(conv(x, w1, b1)), 0.0)
    out = x + inorm(conv(h, w2, b2))
    return jnp.transpose(out, (0, 3, 1, 2))


if __name__ == "__main__":
    N, C, H, W = 2, 4, 16, 16
    KH = KW = 3
    PAD = 1

    key = jax.random.PRNGKey(0)
    kx, kw1, kb1, kw2, kb2 = jax.random.split(key, 5)

    x = jax.random.normal(kx, (N, C, H, W), dtype=jnp.float32)

    # Deterministic init mimicking torch.nn.Conv2d default: U(+-1/sqrt(fan_in)).
    fan_in = C * KH * KW
    bound = 1.0 / (fan_in ** 0.5)
    w1 = jax.random.uniform(kw1, (KH, KW, C, C), jnp.float32, -bound, bound)
    b1 = jax.random.uniform(kb1, (C,), jnp.float32, -bound, bound)
    w2 = jax.random.uniform(kw2, (KH, KW, C, C), jnp.float32, -bound, bound)
    b2 = jax.random.uniform(kb2, (C,), jnp.float32, -bound, bound)

    ref = jax.block_until_ready(_reference_forward(x, w1, b1, w2, b2, pad=PAD))

    # 1) Deploy path: lane-dense flat layout + bf16 MXU operands (f32 accum).
    out = jax.block_until_ready(resnet_block_forward(x, w1, b1, w2, b2, pad=PAD))
    assert out.shape == (N, C, H, W), out.shape
    err_bf16 = float(jnp.max(jnp.abs(out - ref)))
    assert err_bf16 < 8e-2, f"bf16 MXU path max abs err {err_bf16}"

    # 2) Same path with f32 MXU operands: tight check of the fused semantics.
    out_f32 = jax.block_until_ready(
        resnet_block_forward(x, w1, b1, w2, b2, pad=PAD, mxu_dtype=jnp.float32))
    err_f32 = float(jnp.max(jnp.abs(out_f32 - ref)))
    assert err_f32 < 2e-3, f"f32 MXU path max abs err {err_f32}"

    # 3) Force the large-channel per-tap path (f32) to validate that branch too.
    out_taps = jax.block_until_ready(
        resnet_block_forward(x, w1, b1, w2, b2, pad=PAD,
                             mxu_dtype=jnp.float32, force_path="taps"))
    err_taps = float(jnp.max(jnp.abs(out_taps - ref)))
    assert err_taps < 2e-3, f"per-tap path max abs err {err_taps}"

    print("KERNEL_OK")
</pallas_src>

<mosaic_0001>
module attributes {stable_mosaic.version = 11 : i64} {
  func.func @_resblock_kernel_flat(%arg0: i32, %arg1: memref<1x16x64xf32, #tpu.memory_space<vmem>>, %arg2: memref<3x72x64xbf16, #tpu.memory_space<vmem>>, %arg3: memref<3x72x64xbf16, #tpu.memory_space<vmem>>, %arg4: memref<1x16x64xf32, #tpu.memory_space<vmem>>, %arg5: memref<18x72xf32, #tpu.memory_space<vmem>>) attributes {dimension_semantics = [#tpu.dimension_semantics<parallel>], iteration_bounds = array<i64: 2>, scalar_prefetch = 0 : i64, scratch_operands = 1 : i64, tpu.core_type = #tpu.core_type<tc>, window_params = [{transform_indices = @transform_0, window_bounds = array<i64: 1, 16, 64>}, {pipeline_mode = #tpu.pipeline_mode<synchronous>, transform_indices = @transform_1, window_bounds = array<i64: 3, 72, 64>}, {pipeline_mode = #tpu.pipeline_mode<synchronous>, transform_indices = @transform_2, window_bounds = array<i64: 3, 72, 64>}, {transform_indices = @transform_3, window_bounds = array<i64: 1, 16, 64>}]} {
    %c0 = arith.constant 0 : index
    %c0_0 = arith.constant 0 : index
    %c0_1 = arith.constant 0 : index
    %0 = vector.load %arg1[%c0, %c0_0, %c0_1] : memref<1x16x64xf32, #tpu.memory_space<vmem>>, vector<1x16x64xf32>
    %1 = vector.shape_cast %0 : vector<1x16x64xf32> to vector<16x64xf32>
    %c1 = arith.constant 1 : index
    %c4 = arith.constant 4 : index
    %2 = vector.load %arg5[%c1, %c4] : memref<18x72xf32, #tpu.memory_space<vmem>>, vector<16x64xf32>
    tpu.vector_store %arg5[%c1, %c4], %1 {strides = array<i32>} : memref<18x72xf32, #tpu.memory_space<vmem>>, vector<16x64xf32>,
    %3 = vector.extract_strided_slice %1 {offsets = [1, 0], sizes = [1, 64], strides = [1, 1]} : vector<16x64xf32> to vector<1x64xf32>
    %c0_2 = arith.constant 0 : index
    %c4_3 = arith.constant 4 : index
    %4 = vector.load %arg5[%c0_2, %c4_3] : memref<18x72xf32, #tpu.memory_space<vmem>>, vector<1x64xf32>
    tpu.vector_store %arg5[%c0_2, %c4_3], %3 {strides = array<i32>} : memref<18x72xf32, #tpu.memory_space<vmem>>, vector<1x64xf32>,
    %5 = vector.extract_strided_slice %1 {offsets = [14, 0], sizes = [1, 64], strides = [1, 1]} : vector<16x64xf32> to vector<1x64xf32>
    %c17 = arith.constant 17 : index
    %c4_4 = arith.constant 4 : index
    %6 = vector.load %arg5[%c17, %c4_4] : memref<18x72xf32, #tpu.memory_space<vmem>>, vector<1x64xf32>
    tpu.vector_store %arg5[%c17, %c4_4], %5 {strides = array<i32>} : memref<18x72xf32, #tpu.memory_space<vmem>>, vector<1x64xf32>,
    %c0_5 = arith.constant 0 : index
    %c8 = arith.constant 8 : index
    %7 = vector.load %arg5[%c0_5, %c8] : memref<18x72xf32, #tpu.memory_space<vmem>>, vector<18x4xf32>
    %c0_6 = arith.constant 0 : index
    %c0_7 = arith.constant 0 : index
    %8 = vector.load %arg5[%c0_6, %c0_7] : memref<18x72xf32, #tpu.memory_space<vmem>>, vector<18x4xf32>
    tpu.vector_store %arg5[%c0_6, %c0_7], %7 {strides = array<i32>} : memref<18x72xf32, #tpu.memory_space<vmem>>, vector<18x4xf32>,
    %c0_8 = arith.constant 0 : index
    %c60 = arith.constant 60 : index
    %9 = vector.load %arg5[%c0_8, %c60] : memref<18x72xf32, #tpu.memory_space<vmem>>, vector<18x4xf32>
    %c0_9 = arith.constant 0 : index
    %c68 = arith.constant 68 : index
    %10 = vector.load %arg5[%c0_9, %c68] : memref<18x72xf32, #tpu.memory_space<vmem>>, vector<18x4xf32>
    tpu.vector_store %arg5[%c0_9, %c68], %9 {strides = array<i32>} : memref<18x72xf32, #tpu.memory_space<vmem>>, vector<18x4xf32>,
    %c0_10 = arith.constant 0 : index
    %c0_11 = arith.constant 0 : index
    %11 = vector.load %arg5[%c0_10, %c0_11] : memref<18x72xf32, #tpu.memory_space<vmem>>, vector<16x72xf32>
    %12 = arith.truncf %11 : vector<16x72xf32> to vector<16x72xbf16>
    %c0_12 = arith.constant 0 : index
    %c0_13 = arith.constant 0 : index
    %c0_14 = arith.constant 0 : index
    %13 = vector.load %arg2[%c0_12, %c0_13, %c0_14] : memref<3x72x64xbf16, #tpu.memory_space<vmem>>, vector<1x72x64xbf16>
    %14 = vector.shape_cast %13 : vector<1x72x64xbf16> to vector<72x64xbf16>
    %cst = arith.constant dense<0.000000e+00> : vector<16x64xf32>
    %15 = tpu.matmul %12, %14, %cst {dimension_numbers = #tpu.dot_dimension_numbers<[1], [0], [0], [1], [0, 0, 1, 1], [], []>} : vector<16x72xbf16>, vector<72x64xbf16>, vector<16x64xf32> -> vector<16x64xf32>
    %c1_15 = arith.constant 1 : index
    %c0_16 = arith.constant 0 : index
    %16 = vector.load %arg5[%c1_15, %c0_16] : memref<18x72xf32, #tpu.memory_space<vmem>>, vector<16x72xf32>
    %17 = arith.truncf %16 : vector<16x72xf32> to vector<16x72xbf16>
    %c1_17 = arith.constant 1 : index
    %c0_18 = arith.constant 0 : index
    %c0_19 = arith.constant 0 : index
    %18 = vector.load %arg2[%c1_17, %c0_18, %c0_19] : memref<3x72x64xbf16, #tpu.memory_space<vmem>>, vector<1x72x64xbf16>
    %19 = vector.shape_cast %18 : vector<1x72x64xbf16> to vector<72x64xbf16>
    %cst_20 = arith.constant dense<0.000000e+00> : vector<16x64xf32>
    %20 = tpu.matmul %17, %19, %cst_20 {dimension_numbers = #tpu.dot_dimension_numbers<[1], [0], [0], [1], [0, 0, 1, 1], [], []>} : vector<16x72xbf16>, vector<72x64xbf16>, vector<16x64xf32> -> vector<16x64xf32>
    %21 = arith.addf %15, %20 : vector<16x64xf32>
    %c2 = arith.constant 2 : index
    %c0_21 = arith.constant 0 : index
    %22 = vector.load %arg5[%c2, %c0_21] : memref<18x72xf32, #tpu.memory_space<vmem>>, vector<16x72xf32>
    %23 = arith.truncf %22 : vector<16x72xf32> to vector<16x72xbf16>
    %c2_22 = arith.constant 2 : index
    %c0_23 = arith.constant 0 : index
    %c0_24 = arith.constant 0 : index
    %24 = vector.load %arg2[%c2_22, %c0_23, %c0_24] : memref<3x72x64xbf16, #tpu.memory_space<vmem>>, vector<1x72x64xbf16>
    %25 = vector.shape_cast %24 : vector<1x72x64xbf16> to vector<72x64xbf16>
    %cst_25 = arith.constant dense<0.000000e+00> : vector<16x64xf32>
    %26 = tpu.matmul %23, %25, %cst_25 {dimension_numbers = #tpu.dot_dimension_numbers<[1], [0], [0], [1], [0, 0, 1, 1], [], []>} : vector<16x72xbf16>, vector<72x64xbf16>, vector<16x64xf32> -> vector<16x64xf32>
    %27 = arith.addf %21, %26 : vector<16x64xf32>
    %28 = tpu.iota {dimensions = array<i32: 0>} : vector<64x4xi32>
    %c4_i32 = arith.constant 4 : i32
    %c0_i32 = arith.constant 0 : i32
    %29 = arith.cmpi eq, %c4_i32, %c0_i32 : i32
    %c1_i32 = arith.constant 1 : i32
    %30 = arith.select %29, %c1_i32, %c4_i32 : i32
    %31 = vector.broadcast %30 : i32 to vector<64x4xi32>
    %32 = arith.remsi %28, %31 : vector<64x4xi32>
    %c0_i32_26 = arith.constant 0 : i32
    %33 = vector.broadcast %c0_i32_26 : i32 to vector<64x4xi32>
    %34 = arith.cmpi ne, %32, %33 : vector<64x4xi32>
    %c0_i32_27 = arith.constant 0 : i32
    %35 = vector.broadcast %c0_i32_27 : i32 to vector<64x4xi32>
    %36 = arith.cmpi slt, %32, %35 : vector<64x4xi32>
    %c0_i32_28 = arith.constant 0 : i32
    %37 = arith.cmpi slt, %30, %c0_i32_28 : i32
    %38 = vector.broadcast %37 : i1 to vector<64x4xi1>
    %39 = vector.broadcast %38 : vector<64x4xi1> to vector<64x4xi1>
    %40 = arith.xori %36, %39 : vector<64x4xi1>
    %41 = arith.andi %40, %34 : vector<64x4xi1>
    %42 = vector.broadcast %30 : i32 to vector<64x4xi32>
    %43 = arith.addi %32, %42 : vector<64x4xi32>
    %44 = arith.select %41, %43, %32 : vector<64x4xi1>, vector<64x4xi32>
    %45 = tpu.iota {dimensions = array<i32: 1>} : vector<64x4xi32>
    %46 = arith.cmpi eq, %44, %45 : vector<64x4xi32>
    %47 = arith.extui %46 : vector<64x4xi1> to vector<64x4xi32>
    %48 = arith.sitofp %47 : vector<64x4xi32> to vector<64x4xf32>
    %49 = tpu.iota {dimensions = array<i32: 1>} : vector<4x64xi32>
    %c4_i32_29 = arith.constant 4 : i32
    %c0_i32_30 = arith.constant 0 : i32
    %50 = arith.cmpi eq, %c4_i32_29, %c0_i32_30 : i32
    %c1_i32_31 = arith.constant 1 : i32
    %51 = arith.select %50, %c1_i32_31, %c4_i32_29 : i32
    %52 = vector.broadcast %51 : i32 to vector<4x64xi32>
    %53 = arith.remsi %49, %52 : vector<4x64xi32>
    %c0_i32_32 = arith.constant 0 : i32
    %54 = vector.broadcast %c0_i32_32 : i32 to vector<4x64xi32>
    %55 = arith.cmpi ne, %53, %54 : vector<4x64xi32>
    %c0_i32_33 = arith.constant 0 : i32
    %56 = vector.broadcast %c0_i32_33 : i32 to vector<4x64xi32>
    %57 = arith.cmpi slt, %53, %56 : vector<4x64xi32>
    %c0_i32_34 = arith.constant 0 : i32
    %58 = arith.cmpi slt, %51, %c0_i32_34 : i32
    %59 = vector.broadcast %58 : i1 to vector<4x64xi1>
    %60 = vector.broadcast %59 : vector<4x64xi1> to vector<4x64xi1>
    %61 = arith.xori %57, %60 : vector<4x64xi1>
    %62 = arith.andi %61, %55 : vector<4x64xi1>
    %63 = vector.broadcast %51 : i32 to vector<4x64xi32>
    %64 = arith.addi %53, %63 : vector<4x64xi32>
    %65 = arith.select %62, %64, %53 : vector<4x64xi1>, vector<4x64xi32>
    %66 = tpu.iota {dimensions = array<i32: 0>} : vector<4x64xi32>
    %67 = arith.cmpi eq, %65, %66 : vector<4x64xi32>
    %68 = arith.extui %67 : vector<4x64xi1> to vector<4x64xi32>
    %69 = arith.sitofp %68 : vector<4x64xi32> to vector<4x64xf32>
    %cst_35 = arith.constant dense<0.000000e+00> : vector<16x4xf32>
    %70 = tpu.matmul %27, %48, %cst_35 {dimension_numbers = #tpu.dot_dimension_numbers<[1], [0], [0], [1], [0, 0, 1, 1], [], []>} : vector<16x64xf32>, vector<64x4xf32>, vector<16x4xf32> -> vector<16x4xf32>
    %cst_36 = arith.constant dense<0.000000e+00> : vector<16x64xf32>
    %71 = tpu.matmul %70, %69, %cst_36 {dimension_numbers = #tpu.dot_dimension_numbers<[1], [0], [0], [1], [0, 0, 1, 1], [], []>} : vector<16x4xf32>, vector<4x64xf32>, vector<16x64xf32> -> vector<16x64xf32>
    %cst_37 = arith.constant dense<0.000000e+00> : vector<64xf32>
    %72 = vector.multi_reduction <add>, %71, %cst_37 [0] : vector<16x64xf32> to vector<64xf32>
    %73 = vector.shape_cast %72 : vector<64xf32> to vector<1x64xf32>
    %cst_38 = arith.constant 3.906250e-03 : f32
    %74 = vector.broadcast %cst_38 : f32 to vector<1x64xf32>
    %75 = arith.mulf %73, %74 : vector<1x64xf32>
    %76 = vector.broadcast %75 : vector<1x64xf32> to vector<16x64xf32>
    %77 = arith.subf %27, %76 : vector<16x64xf32>
    %78 = arith.mulf %77, %77 : vector<16x64xf32>
    %cst_39 = arith.constant dense<0.000000e+00> : vector<16x4xf32>
    %79 = tpu.matmul %78, %48, %cst_39 {dimension_numbers = #tpu.dot_dimension_numbers<[1], [0], [0], [1], [0, 0, 1, 1], [], []>} : vector<16x64xf32>, vector<64x4xf32>, vector<16x4xf32> -> vector<16x4xf32>
    %cst_40 = arith.constant dense<0.000000e+00> : vector<16x64xf32>
    %80 = tpu.matmul %79, %69, %cst_40 {dimension_numbers = #tpu.dot_dimension_numbers<[1], [0], [0], [1], [0, 0, 1, 1], [], []>} : vector<16x4xf32>, vector<4x64xf32>, vector<16x64xf32> -> vector<16x64xf32>
    %cst_41 = arith.constant dense<0.000000e+00> : vector<64xf32>
    %81 = vector.multi_reduction <add>, %80, %cst_41 [0] : vector<16x64xf32> to vector<64xf32>
    %82 = vector.shape_cast %81 : vector<64xf32> to vector<1x64xf32>
    %cst_42 = arith.constant 3.906250e-03 : f32
    %83 = vector.broadcast %cst_42 : f32 to vector<1x64xf32>
    %84 = arith.mulf %82, %83 : vector<1x64xf32>
    %cst_43 = arith.constant 9.99999974E-6 : f32
    %85 = vector.broadcast %cst_43 : f32 to vector<1x64xf32>
    %86 = arith.addf %84, %85 : vector<1x64xf32>
    %87 = math.rsqrt %86 : vector<1x64xf32>
    %88 = vector.broadcast %87 : vector<1x64xf32> to vector<16x64xf32>
    %89 = arith.mulf %77, %88 : vector<16x64xf32>
    %cst_44 = arith.constant 0.000000e+00 : f32
    %90 = vector.broadcast %cst_44 : f32 to vector<16x64xf32>
    %91 = arith.maximumf %89, %90 : vector<16x64xf32>
    %c1_45 = arith.constant 1 : index
    %c4_46 = arith.constant 4 : index
    %92 = vector.load %arg5[%c1_45, %c4_46] : memref<18x72xf32, #tpu.memory_space<vmem>>, vector<16x64xf32>
    tpu.vector_store %arg5[%c1_45, %c4_46], %91 {strides = array<i32>} : memref<18x72xf32, #tpu.memory_space<vmem>>, vector<16x64xf32>,
    %93 = vector.extract_strided_slice %91 {offsets = [1, 0], sizes = [1, 64], strides = [1, 1]} : vector<16x64xf32> to vector<1x64xf32>
    %c0_47 = arith.constant 0 : index
    %c4_48 = arith.constant 4 : index
    %94 = vector.load %arg5[%c0_47, %c4_48] : memref<18x72xf32, #tpu.memory_space<vmem>>, vector<1x64xf32>
    tpu.vector_store %arg5[%c0_47, %c4_48], %93 {strides = array<i32>} : memref<18x72xf32, #tpu.memory_space<vmem>>, vector<1x64xf32>,
    %95 = vector.extract_strided_slice %91 {offsets = [14, 0], sizes = [1, 64], strides = [1, 1]} : vector<16x64xf32> to vector<1x64xf32>
    %c17_49 = arith.constant 17 : index
    %c4_50 = arith.constant 4 : index
    %96 = vector.load %arg5[%c17_49, %c4_50] : memref<18x72xf32, #tpu.memory_space<vmem>>, vector<1x64xf32>
    tpu.vector_store %arg5[%c17_49, %c4_50], %95 {strides = array<i32>} : memref<18x72xf32, #tpu.memory_space<vmem>>, vector<1x64xf32>,
    %c0_51 = arith.constant 0 : index
    %c8_52 = arith.constant 8 : index
    %97 = vector.load %arg5[%c0_51, %c8_52] : memref<18x72xf32, #tpu.memory_space<vmem>>, vector<18x4xf32>
    %c0_53 = arith.constant 0 : index
    %c0_54 = arith.constant 0 : index
    %98 = vector.load %arg5[%c0_53, %c0_54] : memref<18x72xf32, #tpu.memory_space<vmem>>, vector<18x4xf32>
    tpu.vector_store %arg5[%c0_53, %c0_54], %97 {strides = array<i32>} : memref<18x72xf32, #tpu.memory_space<vmem>>, vector<18x4xf32>,
    %c0_55 = arith.constant 0 : index
    %c60_56 = arith.constant 60 : index
    %99 = vector.load %arg5[%c0_55, %c60_56] : memref<18x72xf32, #tpu.memory_space<vmem>>, vector<18x4xf32>
    %c0_57 = arith.constant 0 : index
    %c68_58 = arith.constant 68 : index
    %100 = vector.load %arg5[%c0_57, %c68_58] : memref<18x72xf32, #tpu.memory_space<vmem>>, vector<18x4xf32>
    tpu.vector_store %arg5[%c0_57, %c68_58], %99 {strides = array<i32>} : memref<18x72xf32, #tpu.memory_space<vmem>>, vector<18x4xf32>,
    %c0_59 = arith.constant 0 : index
    %c0_60 = arith.constant 0 : index
    %101 = vector.load %arg5[%c0_59, %c0_60] : memref<18x72xf32, #tpu.memory_space<vmem>>, vector<16x72xf32>
    %102 = arith.truncf %101 : vector<16x72xf32> to vector<16x72xbf16>
    %c0_61 = arith.constant 0 : index
    %c0_62 = arith.constant 0 : index
    %c0_63 = arith.constant 0 : index
    %103 = vector.load %arg3[%c0_61, %c0_62, %c0_63] : memref<3x72x64xbf16, #tpu.memory_space<vmem>>, vector<1x72x64xbf16>
    %104 = vector.shape_cast %103 : vector<1x72x64xbf16> to vector<72x64xbf16>
    %cst_64 = arith.constant dense<0.000000e+00> : vector<16x64xf32>
    %105 = tpu.matmul %102, %104, %cst_64 {dimension_numbers = #tpu.dot_dimension_numbers<[1], [0], [0], [1], [0, 0, 1, 1], [], []>} : vector<16x72xbf16>, vector<72x64xbf16>, vector<16x64xf32> -> vector<16x64xf32>
    %c1_65 = arith.constant 1 : index
    %c0_66 = arith.constant 0 : index
    %106 = vector.load %arg5[%c1_65, %c0_66] : memref<18x72xf32, #tpu.memory_space<vmem>>, vector<16x72xf32>
    %107 = arith.truncf %106 : vector<16x72xf32> to vector<16x72xbf16>
    %c1_67 = arith.constant 1 : index
    %c0_68 = arith.constant 0 : index
    %c0_69 = arith.constant 0 : index
    %108 = vector.load %arg3[%c1_67, %c0_68, %c0_69] : memref<3x72x64xbf16, #tpu.memory_space<vmem>>, vector<1x72x64xbf16>
    %109 = vector.shape_cast %108 : vector<1x72x64xbf16> to vector<72x64xbf16>
    %cst_70 = arith.constant dense<0.000000e+00> : vector<16x64xf32>
    %110 = tpu.matmul %107, %109, %cst_70 {dimension_numbers = #tpu.dot_dimension_numbers<[1], [0], [0], [1], [0, 0, 1, 1], [], []>} : vector<16x72xbf16>, vector<72x64xbf16>, vector<16x64xf32> -> vector<16x64xf32>
    %111 = arith.addf %105, %110 : vector<16x64xf32>
    %c2_71 = arith.constant 2 : index
    %c0_72 = arith.constant 0 : index
    %112 = vector.load %arg5[%c2_71, %c0_72] : memref<18x72xf32, #tpu.memory_space<vmem>>, vector<16x72xf32>
    %113 = arith.truncf %112 : vector<16x72xf32> to vector<16x72xbf16>
    %c2_73 = arith.constant 2 : index
    %c0_74 = arith.constant 0 : index
    %c0_75 = arith.constant 0 : index
    %114 = vector.load %arg3[%c2_73, %c0_74, %c0_75] : memref<3x72x64xbf16, #tpu.memory_space<vmem>>, vector<1x72x64xbf16>
    %115 = vector.shape_cast %114 : vector<1x72x64xbf16> to vector<72x64xbf16>
    %cst_76 = arith.constant dense<0.000000e+00> : vector<16x64xf32>
    %116 = tpu.matmul %113, %115, %cst_76 {dimension_numbers = #tpu.dot_dimension_numbers<[1], [0], [0], [1], [0, 0, 1, 1], [], []>} : vector<16x72xbf16>, vector<72x64xbf16>, vector<16x64xf32> -> vector<16x64xf32>
    %117 = arith.addf %111, %116 : vector<16x64xf32>
    %118 = tpu.iota {dimensions = array<i32: 0>} : vector<64x4xi32>
    %c4_i32_77 = arith.constant 4 : i32
    %c0_i32_78 = arith.constant 0 : i32
    %119 = arith.cmpi eq, %c4_i32_77, %c0_i32_78 : i32
    %c1_i32_79 = arith.constant 1 : i32
    %120 = arith.select %119, %c1_i32_79, %c4_i32_77 : i32
    %121 = vector.broadcast %120 : i32 to vector<64x4xi32>
    %122 = arith.remsi %118, %121 : vector<64x4xi32>
    %c0_i32_80 = arith.constant 0 : i32
    %123 = vector.broadcast %c0_i32_80 : i32 to vector<64x4xi32>
    %124 = arith.cmpi ne, %122, %123 : vector<64x4xi32>
    %c0_i32_81 = arith.constant 0 : i32
    %125 = vector.broadcast %c0_i32_81 : i32 to vector<64x4xi32>
    %126 = arith.cmpi slt, %122, %125 : vector<64x4xi32>
    %c0_i32_82 = arith.constant 0 : i32
    %127 = arith.cmpi slt, %120, %c0_i32_82 : i32
    %128 = vector.broadcast %127 : i1 to vector<64x4xi1>
    %129 = vector.broadcast %128 : vector<64x4xi1> to vector<64x4xi1>
    %130 = arith.xori %126, %129 : vector<64x4xi1>
    %131 = arith.andi %130, %124 : vector<64x4xi1>
    %132 = vector.broadcast %120 : i32 to vector<64x4xi32>
    %133 = arith.addi %122, %132 : vector<64x4xi32>
    %134 = arith.select %131, %133, %122 : vector<64x4xi1>, vector<64x4xi32>
    %135 = tpu.iota {dimensions = array<i32: 1>} : vector<64x4xi32>
    %136 = arith.cmpi eq, %134, %135 : vector<64x4xi32>
    %137 = arith.extui %136 : vector<64x4xi1> to vector<64x4xi32>
    %138 = arith.sitofp %137 : vector<64x4xi32> to vector<64x4xf32>
    %139 = tpu.iota {dimensions = array<i32: 1>} : vector<4x64xi32>
    %c4_i32_83 = arith.constant 4 : i32
    %c0_i32_84 = arith.constant 0 : i32
    %140 = arith.cmpi eq, %c4_i32_83, %c0_i32_84 : i32
    %c1_i32_85 = arith.constant 1 : i32
    %141 = arith.select %140, %c1_i32_85, %c4_i32_83 : i32
    %142 = vector.broadcast %141 : i32 to vector<4x64xi32>
    %143 = arith.remsi %139, %142 : vector<4x64xi32>
    %c0_i32_86 = arith.constant 0 : i32
    %144 = vector.broadcast %c0_i32_86 : i32 to vector<4x64xi32>
    %145 = arith.cmpi ne, %143, %144 : vector<4x64xi32>
    %c0_i32_87 = arith.constant 0 : i32
    %146 = vector.broadcast %c0_i32_87 : i32 to vector<4x64xi32>
    %147 = arith.cmpi slt, %143, %146 : vector<4x64xi32>
    %c0_i32_88 = arith.constant 0 : i32
    %148 = arith.cmpi slt, %141, %c0_i32_88 : i32
    %149 = vector.broadcast %148 : i1 to vector<4x64xi1>
    %150 = vector.broadcast %149 : vector<4x64xi1> to vector<4x64xi1>
    %151 = arith.xori %147, %150 : vector<4x64xi1>
    %152 = arith.andi %151, %145 : vector<4x64xi1>
    %153 = vector.broadcast %141 : i32 to vector<4x64xi32>
    %154 = arith.addi %143, %153 : vector<4x64xi32>
    %155 = arith.select %152, %154, %143 : vector<4x64xi1>, vector<4x64xi32>
    %156 = tpu.iota {dimensions = array<i32: 0>} : vector<4x64xi32>
    %157 = arith.cmpi eq, %155, %156 : vector<4x64xi32>
    %158 = arith.extui %157 : vector<4x64xi1> to vector<4x64xi32>
    %159 = arith.sitofp %158 : vector<4x64xi32> to vector<4x64xf32>
    %cst_89 = arith.constant dense<0.000000e+00> : vector<16x4xf32>
    %160 = tpu.matmul %117, %138, %cst_89 {dimension_numbers = #tpu.dot_dimension_numbers<[1], [0], [0], [1], [0, 0, 1, 1], [], []>} : vector<16x64xf32>, vector<64x4xf32>, vector<16x4xf32> -> vector<16x4xf32>
    %cst_90 = arith.constant dense<0.000000e+00> : vector<16x64xf32>
    %161 = tpu.matmul %160, %159, %cst_90 {dimension_numbers = #tpu.dot_dimension_numbers<[1], [0], [0], [1], [0, 0, 1, 1], [], []>} : vector<16x4xf32>, vector<4x64xf32>, vector<16x64xf32> -> vector<16x64xf32>
    %cst_91 = arith.constant dense<0.000000e+00> : vector<64xf32>
    %162 = vector.multi_reduction <add>, %161, %cst_91 [0] : vector<16x64xf32> to vector<64xf32>
    %163 = vector.shape_cast %162 : vector<64xf32> to vector<1x64xf32>
    %cst_92 = arith.constant 3.906250e-03 : f32
    %164 = vector.broadcast %cst_92 : f32 to vector<1x64xf32>
    %165 = arith.mulf %163, %164 : vector<1x64xf32>
    %166 = vector.broadcast %165 : vector<1x64xf32> to vector<16x64xf32>
    %167 = arith.subf %117, %166 : vector<16x64xf32>
    %168 = arith.mulf %167, %167 : vector<16x64xf32>
    %cst_93 = arith.constant dense<0.000000e+00> : vector<16x4xf32>
    %169 = tpu.matmul %168, %138, %cst_93 {dimension_numbers = #tpu.dot_dimension_numbers<[1], [0], [0], [1], [0, 0, 1, 1], [], []>} : vector<16x64xf32>, vector<64x4xf32>, vector<16x4xf32> -> vector<16x4xf32>
    %cst_94 = arith.constant dense<0.000000e+00> : vector<16x64xf32>
    %170 = tpu.matmul %169, %159, %cst_94 {dimension_numbers = #tpu.dot_dimension_numbers<[1], [0], [0], [1], [0, 0, 1, 1], [], []>} : vector<16x4xf32>, vector<4x64xf32>, vector<16x64xf32> -> vector<16x64xf32>
    %cst_95 = arith.constant dense<0.000000e+00> : vector<64xf32>
    %171 = vector.multi_reduction <add>, %170, %cst_95 [0] : vector<16x64xf32> to vector<64xf32>
    %172 = vector.shape_cast %171 : vector<64xf32> to vector<1x64xf32>
    %cst_96 = arith.constant 3.906250e-03 : f32
    %173 = vector.broadcast %cst_96 : f32 to vector<1x64xf32>
    %174 = arith.mulf %172, %173 : vector<1x64xf32>
    %cst_97 = arith.constant 9.99999974E-6 : f32
    %175 = vector.broadcast %cst_97 : f32 to vector<1x64xf32>
    %176 = arith.addf %174, %175 : vector<1x64xf32>
    %177 = math.rsqrt %176 : vector<1x64xf32>
    %178 = vector.broadcast %177 : vector<1x64xf32> to vector<16x64xf32>
    %179 = arith.mulf %167, %178 : vector<16x64xf32>
    %180 = arith.addf %1, %179 : vector<16x64xf32>
    %c0_98 = arith.constant 0 : index
    %c0_99 = arith.constant 0 : index
    %c0_100 = arith.constant 0 : index
    %181 = vector.load %arg4[%c0_98, %c0_99, %c0_100] : memref<1x16x64xf32, #tpu.memory_space<vmem>>, vector<1x16x64xf32>
    %182 = vector.shape_cast %181 : vector<1x16x64xf32> to vector<16x64xf32>
    %183 = vector.shape_cast %180 : vector<16x64xf32> to vector<1x16x64xf32>
    tpu.vector_store %arg4[%c0_98, %c0_99, %c0_100], %183 {strides = array<i32>} : memref<1x16x64xf32, #tpu.memory_space<vmem>>, vector<1x16x64xf32>,
    return
  }
  func.func @transform_0(%arg0: i32) -> (i32, i32, i32) {
    %c0_i32 = arith.constant 0 : i32
    %c0_i32_0 = arith.constant 0 : i32
    %c0_i32_1 = arith.constant 0 : i32
    return %arg0, %c0_i32, %c0_i32_0 : i32, i32, i32
  }
  func.func @transform_1(%arg0: i32) -> (i32, i32, i32) {
    %c0_i32 = arith.constant 0 : i32
    %c0_i32_0 = arith.constant 0 : i32
    %c0_i32_1 = arith.constant 0 : i32
    %c0_i32_2 = arith.constant 0 : i32
    return %c0_i32, %c0_i32_0, %c0_i32_1 : i32, i32, i32
  }
  func.func @transform_2(%arg0: i32) -> (i32, i32, i32) {
    %c0_i32 = arith.constant 0 : i32
    %c0_i32_0 = arith.constant 0 : i32
    %c0_i32_1 = arith.constant 0 : i32
    %c0_i32_2 = arith.constant 0 : i32
    return %c0_i32, %c0_i32_0, %c0_i32_1 : i32, i32, i32
  }
  func.func @transform_3(%arg0: i32) -> (i32, i32, i32) {
    %c0_i32 = arith.constant 0 : i32
    %c0_i32_0 = arith.constant 0 : i32
    %c0_i32_1 = arith.constant 0 : i32
    return %arg0, %c0_i32, %c0_i32_0 : i32, i32, i32
  }
}

module attributes {stable_mosaic.version = 11 : i64} {
  func.func @_resblock_kernel_flat(%arg0: i32, %arg1: memref<1x16x64xf32, #tpu.memory_space<vmem>>, %arg2: memref<3x72x64xbf16, #tpu.memory_space<vmem>>, %arg3: memref<3x72x64xbf16, #tpu.memory_space<vmem>>, %arg4: memref<1x16x64xf32, #tpu.memory_space<vmem>>, %arg5: memref<18x72xf32, #tpu.memory_space<vmem>>) attributes {dimension_semantics = [#tpu.dimension_semantics<parallel>], iteration_bounds = array<i64: 2>, scalar_prefetch = 0 : i64, scratch_operands = 1 : i64, tpu.core_type = #tpu.core_type<tc>, window_params = [{transform_indices = @transform_0, window_bounds = array<i64: 1, 16, 64>}, {pipeline_mode = #tpu.pipeline_mode<synchronous>, transform_indices = @transform_1, window_bounds = array<i64: 3, 72, 64>}, {pipeline_mode = #tpu.pipeline_mode<synchronous>, transform_indices = @transform_2, window_bounds = array<i64: 3, 72, 64>}, {transform_indices = @transform_3, window_bounds = array<i64: 1, 16, 64>}]} {
    %c0 = arith.constant 0 : index
    %c0_0 = arith.constant 0 : index
    %c0_1 = arith.constant 0 : index
    %0 = vector.load %arg1[%c0, %c0_0, %c0_1] : memref<1x16x64xf32, #tpu.memory_space<vmem>>, vector<1x16x64xf32>
    %1 = vector.shape_cast %0 : vector<1x16x64xf32> to vector<16x64xf32>
    %c1 = arith.constant 1 : index
    %c4 = arith.constant 4 : index
    %2 = vector.load %arg5[%c1, %c4] : memref<18x72xf32, #tpu.memory_space<vmem>>, vector<16x64xf32>
    tpu.vector_store %arg5[%c1, %c4], %1 {strides = array<i32>} : memref<18x72xf32, #tpu.memory_space<vmem>>, vector<16x64xf32>,
    %3 = vector.extract_strided_slice %1 {offsets = [1, 0], sizes = [1, 64], strides = [1, 1]} : vector<16x64xf32> to vector<1x64xf32>
    %c0_2 = arith.constant 0 : index
    %c4_3 = arith.constant 4 : index
    %4 = vector.load %arg5[%c0_2, %c4_3] : memref<18x72xf32, #tpu.memory_space<vmem>>, vector<1x64xf32>
    tpu.vector_store %arg5[%c0_2, %c4_3], %3 {strides = array<i32>} : memref<18x72xf32, #tpu.memory_space<vmem>>, vector<1x64xf32>,
    %5 = vector.extract_strided_slice %1 {offsets = [14, 0], sizes = [1, 64], strides = [1, 1]} : vector<16x64xf32> to vector<1x64xf32>
    %c17 = arith.constant 17 : index
    %c4_4 = arith.constant 4 : index
    %6 = vector.load %arg5[%c17, %c4_4] : memref<18x72xf32, #tpu.memory_space<vmem>>, vector<1x64xf32>
    tpu.vector_store %arg5[%c17, %c4_4], %5 {strides = array<i32>} : memref<18x72xf32, #tpu.memory_space<vmem>>, vector<1x64xf32>,
    %c0_5 = arith.constant 0 : index
    %c8 = arith.constant 8 : index
    %7 = vector.load %arg5[%c0_5, %c8] : memref<18x72xf32, #tpu.memory_space<vmem>>, vector<18x4xf32>
    %c0_6 = arith.constant 0 : index
    %c0_7 = arith.constant 0 : index
    %8 = vector.load %arg5[%c0_6, %c0_7] : memref<18x72xf32, #tpu.memory_space<vmem>>, vector<18x4xf32>
    tpu.vector_store %arg5[%c0_6, %c0_7], %7 {strides = array<i32>} : memref<18x72xf32, #tpu.memory_space<vmem>>, vector<18x4xf32>,
    %c0_8 = arith.constant 0 : index
    %c60 = arith.constant 60 : index
    %9 = vector.load %arg5[%c0_8, %c60] : memref<18x72xf32, #tpu.memory_space<vmem>>, vector<18x4xf32>
    %c0_9 = arith.constant 0 : index
    %c68 = arith.constant 68 : index
    %10 = vector.load %arg5[%c0_9, %c68] : memref<18x72xf32, #tpu.memory_space<vmem>>, vector<18x4xf32>
    tpu.vector_store %arg5[%c0_9, %c68], %9 {strides = array<i32>} : memref<18x72xf32, #tpu.memory_space<vmem>>, vector<18x4xf32>,
    %c0_10 = arith.constant 0 : index
    %c0_11 = arith.constant 0 : index
    %11 = vector.load %arg5[%c0_10, %c0_11] : memref<18x72xf32, #tpu.memory_space<vmem>>, vector<16x72xf32>
    %12 = arith.truncf %11 : vector<16x72xf32> to vector<16x72xbf16>
    %c0_12 = arith.constant 0 : index
    %c0_13 = arith.constant 0 : index
    %c0_14 = arith.constant 0 : index
    %13 = vector.load %arg2[%c0_12, %c0_13, %c0_14] : memref<3x72x64xbf16, #tpu.memory_space<vmem>>, vector<1x72x64xbf16>
    %14 = vector.shape_cast %13 : vector<1x72x64xbf16> to vector<72x64xbf16>
    %cst = arith.constant dense<0.000000e+00> : vector<16x64xf32>
    %15 = tpu.matmul %12, %14, %cst {dimension_numbers = #tpu.dot_dimension_numbers<[1], [0], [0], [1], [0, 0, 1, 1], [], []>} : vector<16x72xbf16>, vector<72x64xbf16>, vector<16x64xf32> -> vector<16x64xf32>
    %c1_15 = arith.constant 1 : index
    %c0_16 = arith.constant 0 : index
    %16 = vector.load %arg5[%c1_15, %c0_16] : memref<18x72xf32, #tpu.memory_space<vmem>>, vector<16x72xf32>
    %17 = arith.truncf %16 : vector<16x72xf32> to vector<16x72xbf16>
    %c1_17 = arith.constant 1 : index
    %c0_18 = arith.constant 0 : index
    %c0_19 = arith.constant 0 : index
    %18 = vector.load %arg2[%c1_17, %c0_18, %c0_19] : memref<3x72x64xbf16, #tpu.memory_space<vmem>>, vector<1x72x64xbf16>
    %19 = vector.shape_cast %18 : vector<1x72x64xbf16> to vector<72x64xbf16>
    %cst_20 = arith.constant dense<0.000000e+00> : vector<16x64xf32>
    %20 = tpu.matmul %17, %19, %cst_20 {dimension_numbers = #tpu.dot_dimension_numbers<[1], [0], [0], [1], [0, 0, 1, 1], [], []>} : vector<16x72xbf16>, vector<72x64xbf16>, vector<16x64xf32> -> vector<16x64xf32>
    %21 = arith.addf %15, %20 : vector<16x64xf32>
    %c2 = arith.constant 2 : index
    %c0_21 = arith.constant 0 : index
    %22 = vector.load %arg5[%c2, %c0_21] : memref<18x72xf32, #tpu.memory_space<vmem>>, vector<16x72xf32>
    %23 = arith.truncf %22 : vector<16x72xf32> to vector<16x72xbf16>
    %c2_22 = arith.constant 2 : index
    %c0_23 = arith.constant 0 : index
    %c0_24 = arith.constant 0 : index
    %24 = vector.load %arg2[%c2_22, %c0_23, %c0_24] : memref<3x72x64xbf16, #tpu.memory_space<vmem>>, vector<1x72x64xbf16>
    %25 = vector.shape_cast %24 : vector<1x72x64xbf16> to vector<72x64xbf16>
    %cst_25 = arith.constant dense<0.000000e+00> : vector<16x64xf32>
    %26 = tpu.matmul %23, %25, %cst_25 {dimension_numbers = #tpu.dot_dimension_numbers<[1], [0], [0], [1], [0, 0, 1, 1], [], []>} : vector<16x72xbf16>, vector<72x64xbf16>, vector<16x64xf32> -> vector<16x64xf32>
    %27 = arith.addf %21, %26 : vector<16x64xf32>
    %28 = tpu.iota {dimensions = array<i32: 0>} : vector<64x4xi32>
    %c4_i32 = arith.constant 4 : i32
    %c0_i32 = arith.constant 0 : i32
    %29 = arith.cmpi eq, %c4_i32, %c0_i32 : i32
    %c1_i32 = arith.constant 1 : i32
    %30 = arith.select %29, %c1_i32, %c4_i32 : i32
    %31 = vector.broadcast %30 : i32 to vector<64x4xi32>
    %32 = arith.remsi %28, %31 : vector<64x4xi32>
    %c0_i32_26 = arith.constant 0 : i32
    %33 = vector.broadcast %c0_i32_26 : i32 to vector<64x4xi32>
    %34 = arith.cmpi ne, %32, %33 : vector<64x4xi32>
    %c0_i32_27 = arith.constant 0 : i32
    %35 = vector.broadcast %c0_i32_27 : i32 to vector<64x4xi32>
    %36 = arith.cmpi slt, %32, %35 : vector<64x4xi32>
    %c0_i32_28 = arith.constant 0 : i32
    %37 = arith.cmpi slt, %30, %c0_i32_28 : i32
    %38 = vector.broadcast %37 : i1 to vector<64x4xi1>
    %39 = vector.broadcast %38 : vector<64x4xi1> to vector<64x4xi1>
    %40 = arith.xori %36, %39 : vector<64x4xi1>
    %41 = arith.andi %40, %34 : vector<64x4xi1>
    %42 = vector.broadcast %30 : i32 to vector<64x4xi32>
    %43 = arith.addi %32, %42 : vector<64x4xi32>
    %44 = arith.select %41, %43, %32 : vector<64x4xi1>, vector<64x4xi32>
    %45 = tpu.iota {dimensions = array<i32: 1>} : vector<64x4xi32>
    %46 = arith.cmpi eq, %44, %45 : vector<64x4xi32>
    %47 = arith.extui %46 : vector<64x4xi1> to vector<64x4xi32>
    %48 = arith.sitofp %47 : vector<64x4xi32> to vector<64x4xf32>
    %49 = tpu.iota {dimensions = array<i32: 1>} : vector<4x64xi32>
    %c4_i32_29 = arith.constant 4 : i32
    %c0_i32_30 = arith.constant 0 : i32
    %50 = arith.cmpi eq, %c4_i32_29, %c0_i32_30 : i32
    %c1_i32_31 = arith.constant 1 : i32
    %51 = arith.select %50, %c1_i32_31, %c4_i32_29 : i32
    %52 = vector.broadcast %51 : i32 to vector<4x64xi32>
    %53 = arith.remsi %49, %52 : vector<4x64xi32>
    %c0_i32_32 = arith.constant 0 : i32
    %54 = vector.broadcast %c0_i32_32 : i32 to vector<4x64xi32>
    %55 = arith.cmpi ne, %53, %54 : vector<4x64xi32>
    %c0_i32_33 = arith.constant 0 : i32
    %56 = vector.broadcast %c0_i32_33 : i32 to vector<4x64xi32>
    %57 = arith.cmpi slt, %53, %56 : vector<4x64xi32>
    %c0_i32_34 = arith.constant 0 : i32
    %58 = arith.cmpi slt, %51, %c0_i32_34 : i32
    %59 = vector.broadcast %58 : i1 to vector<4x64xi1>
    %60 = vector.broadcast %59 : vector<4x64xi1> to vector<4x64xi1>
    %61 = arith.xori %57, %60 : vector<4x64xi1>
    %62 = arith.andi %61, %55 : vector<4x64xi1>
    %63 = vector.broadcast %51 : i32 to vector<4x64xi32>
    %64 = arith.addi %53, %63 : vector<4x64xi32>
    %65 = arith.select %62, %64, %53 : vector<4x64xi1>, vector<4x64xi32>
    %66 = tpu.iota {dimensions = array<i32: 0>} : vector<4x64xi32>
    %67 = arith.cmpi eq, %65, %66 : vector<4x64xi32>
    %68 = arith.extui %67 : vector<4x64xi1> to vector<4x64xi32>
    %69 = arith.sitofp %68 : vector<4x64xi32> to vector<4x64xf32>
    %cst_35 = arith.constant dense<0.000000e+00> : vector<16x4xf32>
    %70 = tpu.matmul %27, %48, %cst_35 {dimension_numbers = #tpu.dot_dimension_numbers<[1], [0], [0], [1], [0, 0, 1, 1], [], []>} : vector<16x64xf32>, vector<64x4xf32>, vector<16x4xf32> -> vector<16x4xf32>
    %cst_36 = arith.constant dense<0.000000e+00> : vector<16x64xf32>
    %71 = tpu.matmul %70, %69, %cst_36 {dimension_numbers = #tpu.dot_dimension_numbers<[1], [0], [0], [1], [0, 0, 1, 1], [], []>} : vector<16x4xf32>, vector<4x64xf32>, vector<16x64xf32> -> vector<16x64xf32>
    %cst_37 = arith.constant dense<0.000000e+00> : vector<64xf32>
    %72 = vector.multi_reduction <add>, %71, %cst_37 [0] : vector<16x64xf32> to vector<64xf32>
    %73 = vector.shape_cast %72 : vector<64xf32> to vector<1x64xf32>
    %cst_38 = arith.constant 3.906250e-03 : f32
    %74 = vector.broadcast %cst_38 : f32 to vector<1x64xf32>
    %75 = arith.mulf %73, %74 : vector<1x64xf32>
    %76 = vector.broadcast %75 : vector<1x64xf32> to vector<16x64xf32>
    %77 = arith.subf %27, %76 : vector<16x64xf32>
    %78 = arith.mulf %77, %77 : vector<16x64xf32>
    %cst_39 = arith.constant dense<0.000000e+00> : vector<16x4xf32>
    %79 = tpu.matmul %78, %48, %cst_39 {dimension_numbers = #tpu.dot_dimension_numbers<[1], [0], [0], [1], [0, 0, 1, 1], [], []>} : vector<16x64xf32>, vector<64x4xf32>, vector<16x4xf32> -> vector<16x4xf32>
    %cst_40 = arith.constant dense<0.000000e+00> : vector<16x64xf32>
    %80 = tpu.matmul %79, %69, %cst_40 {dimension_numbers = #tpu.dot_dimension_numbers<[1], [0], [0], [1], [0, 0, 1, 1], [], []>} : vector<16x4xf32>, vector<4x64xf32>, vector<16x64xf32> -> vector<16x64xf32>
    %cst_41 = arith.constant dense<0.000000e+00> : vector<64xf32>
    %81 = vector.multi_reduction <add>, %80, %cst_41 [0] : vector<16x64xf32> to vector<64xf32>
    %82 = vector.shape_cast %81 : vector<64xf32> to vector<1x64xf32>
    %cst_42 = arith.constant 3.906250e-03 : f32
    %83 = vector.broadcast %cst_42 : f32 to vector<1x64xf32>
    %84 = arith.mulf %82, %83 : vector<1x64xf32>
    %cst_43 = arith.constant 9.99999974E-6 : f32
    %85 = vector.broadcast %cst_43 : f32 to vector<1x64xf32>
    %86 = arith.addf %84, %85 : vector<1x64xf32>
    %87 = math.rsqrt %86 : vector<1x64xf32>
    %88 = vector.broadcast %87 : vector<1x64xf32> to vector<16x64xf32>
    %89 = arith.mulf %77, %88 : vector<16x64xf32>
    %cst_44 = arith.constant 0.000000e+00 : f32
    %90 = vector.broadcast %cst_44 : f32 to vector<16x64xf32>
    %91 = arith.maximumf %89, %90 : vector<16x64xf32>
    %c1_45 = arith.constant 1 : index
    %c4_46 = arith.constant 4 : index
    %92 = vector.load %arg5[%c1_45, %c4_46] : memref<18x72xf32, #tpu.memory_space<vmem>>, vector<16x64xf32>
    tpu.vector_store %arg5[%c1_45, %c4_46], %91 {strides = array<i32>} : memref<18x72xf32, #tpu.memory_space<vmem>>, vector<16x64xf32>,
    %93 = vector.extract_strided_slice %91 {offsets = [1, 0], sizes = [1, 64], strides = [1, 1]} : vector<16x64xf32> to vector<1x64xf32>
    %c0_47 = arith.constant 0 : index
    %c4_48 = arith.constant 4 : index
    %94 = vector.load %arg5[%c0_47, %c4_48] : memref<18x72xf32, #tpu.memory_space<vmem>>, vector<1x64xf32>
    tpu.vector_store %arg5[%c0_47, %c4_48], %93 {strides = array<i32>} : memref<18x72xf32, #tpu.memory_space<vmem>>, vector<1x64xf32>,
    %95 = vector.extract_strided_slice %91 {offsets = [14, 0], sizes = [1, 64], strides = [1, 1]} : vector<16x64xf32> to vector<1x64xf32>
    %c17_49 = arith.constant 17 : index
    %c4_50 = arith.constant 4 : index
    %96 = vector.load %arg5[%c17_49, %c4_50] : memref<18x72xf32, #tpu.memory_space<vmem>>, vector<1x64xf32>
    tpu.vector_store %arg5[%c17_49, %c4_50], %95 {strides = array<i32>} : memref<18x72xf32, #tpu.memory_space<vmem>>, vector<1x64xf32>,
    %c0_51 = arith.constant 0 : index
    %c8_52 = arith.constant 8 : index
    %97 = vector.load %arg5[%c0_51, %c8_52] : memref<18x72xf32, #tpu.memory_space<vmem>>, vector<18x4xf32>
    %c0_53 = arith.constant 0 : index
    %c0_54 = arith.constant 0 : index
    %98 = vector.load %arg5[%c0_53, %c0_54] : memref<18x72xf32, #tpu.memory_space<vmem>>, vector<18x4xf32>
    tpu.vector_store %arg5[%c0_53, %c0_54], %97 {strides = array<i32>} : memref<18x72xf32, #tpu.memory_space<vmem>>, vector<18x4xf32>,
    %c0_55 = arith.constant 0 : index
    %c60_56 = arith.constant 60 : index
    %99 = vector.load %arg5[%c0_55, %c60_56] : memref<18x72xf32, #tpu.memory_space<vmem>>, vector<18x4xf32>
    %c0_57 = arith.constant 0 : index
    %c68_58 = arith.constant 68 : index
    %100 = vector.load %arg5[%c0_57, %c68_58] : memref<18x72xf32, #tpu.memory_space<vmem>>, vector<18x4xf32>
    tpu.vector_store %arg5[%c0_57, %c68_58], %99 {strides = array<i32>} : memref<18x72xf32, #tpu.memory_space<vmem>>, vector<18x4xf32>,
    %c0_59 = arith.constant 0 : index
    %c0_60 = arith.constant 0 : index
    %101 = vector.load %arg5[%c0_59, %c0_60] : memref<18x72xf32, #tpu.memory_space<vmem>>, vector<16x72xf32>
    %102 = arith.truncf %101 : vector<16x72xf32> to vector<16x72xbf16>
    %c0_61 = arith.constant 0 : index
    %c0_62 = arith.constant 0 : index
    %c0_63 = arith.constant 0 : index
    %103 = vector.load %arg3[%c0_61, %c0_62, %c0_63] : memref<3x72x64xbf16, #tpu.memory_space<vmem>>, vector<1x72x64xbf16>
    %104 = vector.shape_cast %103 : vector<1x72x64xbf16> to vector<72x64xbf16>
    %cst_64 = arith.constant dense<0.000000e+00> : vector<16x64xf32>
    %105 = tpu.matmul %102, %104, %cst_64 {dimension_numbers = #tpu.dot_dimension_numbers<[1], [0], [0], [1], [0, 0, 1, 1], [], []>} : vector<16x72xbf16>, vector<72x64xbf16>, vector<16x64xf32> -> vector<16x64xf32>
    %c1_65 = arith.constant 1 : index
    %c0_66 = arith.constant 0 : index
    %106 = vector.load %arg5[%c1_65, %c0_66] : memref<18x72xf32, #tpu.memory_space<vmem>>, vector<16x72xf32>
    %107 = arith.truncf %106 : vector<16x72xf32> to vector<16x72xbf16>
    %c1_67 = arith.constant 1 : index
    %c0_68 = arith.constant 0 : index
    %c0_69 = arith.constant 0 : index
    %108 = vector.load %arg3[%c1_67, %c0_68, %c0_69] : memref<3x72x64xbf16, #tpu.memory_space<vmem>>, vector<1x72x64xbf16>
    %109 = vector.shape_cast %108 : vector<1x72x64xbf16> to vector<72x64xbf16>
    %cst_70 = arith.constant dense<0.000000e+00> : vector<16x64xf32>
    %110 = tpu.matmul %107, %109, %cst_70 {dimension_numbers = #tpu.dot_dimension_numbers<[1], [0], [0], [1], [0, 0, 1, 1], [], []>} : vector<16x72xbf16>, vector<72x64xbf16>, vector<16x64xf32> -> vector<16x64xf32>
    %111 = arith.addf %105, %110 : vector<16x64xf32>
    %c2_71 = arith.constant 2 : index
    %c0_72 = arith.constant 0 : index
    %112 = vector.load %arg5[%c2_71, %c0_72] : memref<18x72xf32, #tpu.memory_space<vmem>>, vector<16x72xf32>
    %113 = arith.truncf %112 : vector<16x72xf32> to vector<16x72xbf16>
    %c2_73 = arith.constant 2 : index
    %c0_74 = arith.constant 0 : index
    %c0_75 = arith.constant 0 : index
    %114 = vector.load %arg3[%c2_73, %c0_74, %c0_75] : memref<3x72x64xbf16, #tpu.memory_space<vmem>>, vector<1x72x64xbf16>
    %115 = vector.shape_cast %114 : vector<1x72x64xbf16> to vector<72x64xbf16>
    %cst_76 = arith.constant dense<0.000000e+00> : vector<16x64xf32>
    %116 = tpu.matmul %113, %115, %cst_76 {dimension_numbers = #tpu.dot_dimension_numbers<[1], [0], [0], [1], [0, 0, 1, 1], [], []>} : vector<16x72xbf16>, vector<72x64xbf16>, vector<16x64xf32> -> vector<16x64xf32>
    %117 = arith.addf %111, %116 : vector<16x64xf32>
    %118 = tpu.iota {dimensions = array<i32: 0>} : vector<64x4xi32>
    %c4_i32_77 = arith.constant 4 : i32
    %c0_i32_78 = arith.constant 0 : i32
    %119 = arith.cmpi eq, %c4_i32_77, %c0_i32_78 : i32
    %c1_i32_79 = arith.constant 1 : i32
    %120 = arith.select %119, %c1_i32_79, %c4_i32_77 : i32
    %121 = vector.broadcast %120 : i32 to vector<64x4xi32>
    %122 = arith.remsi %118, %121 : vector<64x4xi32>
    %c0_i32_80 = arith.constant 0 : i32
    %123 = vector.broadcast %c0_i32_80 : i32 to vector<64x4xi32>
    %124 = arith.cmpi ne, %122, %123 : vector<64x4xi32>
    %c0_i32_81 = arith.constant 0 : i32
    %125 = vector.broadcast %c0_i32_81 : i32 to vector<64x4xi32>
    %126 = arith.cmpi slt, %122, %125 : vector<64x4xi32>
    %c0_i32_82 = arith.constant 0 : i32
    %127 = arith.cmpi slt, %120, %c0_i32_82 : i32
    %128 = vector.broadcast %127 : i1 to vector<64x4xi1>
    %129 = vector.broadcast %128 : vector<64x4xi1> to vector<64x4xi1>
    %130 = arith.xori %126, %129 : vector<64x4xi1>
    %131 = arith.andi %130, %124 : vector<64x4xi1>
    %132 = vector.broadcast %120 : i32 to vector<64x4xi32>
    %133 = arith.addi %122, %132 : vector<64x4xi32>
    %134 = arith.select %131, %133, %122 : vector<64x4xi1>, vector<64x4xi32>
    %135 = tpu.iota {dimensions = array<i32: 1>} : vector<64x4xi32>
    %136 = arith.cmpi eq, %134, %135 : vector<64x4xi32>
    %137 = arith.extui %136 : vector<64x4xi1> to vector<64x4xi32>
    %138 = arith.sitofp %137 : vector<64x4xi32> to vector<64x4xf32>
    %139 = tpu.iota {dimensions = array<i32: 1>} : vector<4x64xi32>
    %c4_i32_83 = arith.constant 4 : i32
    %c0_i32_84 = arith.constant 0 : i32
    %140 = arith.cmpi eq, %c4_i32_83, %c0_i32_84 : i32
    %c1_i32_85 = arith.constant 1 : i32
    %141 = arith.select %140, %c1_i32_85, %c4_i32_83 : i32
    %142 = vector.broadcast %141 : i32 to vector<4x64xi32>
    %143 = arith.remsi %139, %142 : vector<4x64xi32>
    %c0_i32_86 = arith.constant 0 : i32
    %144 = vector.broadcast %c0_i32_86 : i32 to vector<4x64xi32>
    %145 = arith.cmpi ne, %143, %144 : vector<4x64xi32>
    %c0_i32_87 = arith.constant 0 : i32
    %146 = vector.broadcast %c0_i32_87 : i32 to vector<4x64xi32>
    %147 = arith.cmpi slt, %143, %146 : vector<4x64xi32>
    %c0_i32_88 = arith.constant 0 : i32
    %148 = arith.cmpi slt, %141, %c0_i32_88 : i32
    %149 = vector.broadcast %148 : i1 to vector<4x64xi1>
    %150 = vector.broadcast %149 : vector<4x64xi1> to vector<4x64xi1>
    %151 = arith.xori %147, %150 : vector<4x64xi1>
    %152 = arith.andi %151, %145 : vector<4x64xi1>
    %153 = vector.broadcast %141 : i32 to vector<4x64xi32>
    %154 = arith.addi %143, %153 : vector<4x64xi32>
    %155 = arith.select %152, %154, %143 : vector<4x64xi1>, vector<4x64xi32>
    %156 = tpu.iota {dimensions = array<i32: 0>} : vector<4x64xi32>
    %157 = arith.cmpi eq, %155, %156 : vector<4x64xi32>
    %158 = arith.extui %157 : vector<4x64xi1> to vector<4x64xi32>
    %159 = arith.sitofp %158 : vector<4x64xi32> to vector<4x64xf32>
    %cst_89 = arith.constant dense<0.000000e+00> : vector<16x4xf32>
    %160 = tpu.matmul %117, %138, %cst_89 {dimension_numbers = #tpu.dot_dimension_numbers<[1], [0], [0], [1], [0, 0, 1, 1], [], []>} : vector<16x64xf32>, vector<64x4xf32>, vector<16x4xf32> -> vector<16x4xf32>
    %cst_90 = arith.constant dense<0.000000e+00> : vector<16x64xf32>
    %161 = tpu.matmul %160, %159, %cst_90 {dimension_numbers = #tpu.dot_dimension_numbers<[1], [0], [0], [1], [0, 0, 1, 1], [], []>} : vector<16x4xf32>, vector<4x64xf32>, vector<16x64xf32> -> vector<16x64xf32>
    %cst_91 = arith.constant dense<0.000000e+00> : vector<64xf32>
    %162 = vector.multi_reduction <add>, %161, %cst_91 [0] : vector<16x64xf32> to vector<64xf32>
    %163 = vector.shape_cast %162 : vector<64xf32> to vector<1x64xf32>
    %cst_92 = arith.constant 3.906250e-03 : f32
    %164 = vector.broadcast %cst_92 : f32 to vector<1x64xf32>
    %165 = arith.mulf %163, %164 : vector<1x64xf32>
    %166 = vector.broadcast %165 : vector<1x64xf32> to vector<16x64xf32>
    %167 = arith.subf %117, %166 : vector<16x64xf32>
    %168 = arith.mulf %167, %167 : vector<16x64xf32>
    %cst_93 = arith.constant dense<0.000000e+00> : vector<16x4xf32>
    %169 = tpu.matmul %168, %138, %cst_93 {dimension_numbers = #tpu.dot_dimension_numbers<[1], [0], [0], [1], [0, 0, 1, 1], [], []>} : vector<16x64xf32>, vector<64x4xf32>, vector<16x4xf32> -> vector<16x4xf32>
    %cst_94 = arith.constant dense<0.000000e+00> : vector<16x64xf32>
    %170 = tpu.matmul %169, %159, %cst_94 {dimension_numbers = #tpu.dot_dimension_numbers<[1], [0], [0], [1], [0, 0, 1, 1], [], []>} : vector<16x4xf32>, vector<4x64xf32>, vector<16x64xf32> -> vector<16x64xf32>
    %cst_95 = arith.constant dense<0.000000e+00> : vector<64xf32>
    %171 = vector.multi_reduction <add>, %170, %cst_95 [0] : vector<16x64xf32> to vector<64xf32>
    %172 = vector.shape_cast %171 : vector<64xf32> to vector<1x64xf32>
    %cst_96 = arith.constant 3.906250e-03 : f32
    %173 = vector.broadcast %cst_96 : f32 to vector<1x64xf32>
    %174 = arith.mulf %172, %173 : vector<1x64xf32>
    %cst_97 = arith.constant 9.99999974E-6 : f32
    %175 = vector.broadcast %cst_97 : f32 to vector<1x64xf32>
    %176 = arith.addf %174, %175 : vector<1x64xf32>
    %177 = math.rsqrt %176 : vector<1x64xf32>
    %178 = vector.broadcast %177 : vector<1x64xf32> to vector<16x64xf32>
    %179 = arith.mulf %167, %178 : vector<16x64xf32>
    %180 = arith.addf %1, %179 : vector<16x64xf32>
    %c0_98 = arith.constant 0 : index
    %c0_99 = arith.constant 0 : index
    %c0_100 = arith.constant 0 : index
    %181 = vector.load %arg4[%c0_98, %c0_99, %c0_100] : memref<1x16x64xf32, #tpu.memory_space<vmem>>, vector<1x16x64xf32>
    %182 = vector.shape_cast %181 : vector<1x16x64xf32> to vector<16x64xf32>
    %183 = vector.shape_cast %180 : vector<16x64xf32> to vector<1x16x64xf32>
    tpu.vector_store %arg4[%c0_98, %c0_99, %c0_100], %183 {strides = array<i32>} : memref<1x16x64xf32, #tpu.memory_space<vmem>>, vector<1x16x64xf32>,
    return
  }
  func.func @transform_0(%arg0: i32) -> (i32, i32, i32) {
    %c0_i32 = arith.constant 0 : i32
    %c0_i32_0 = arith.constant 0 : i32
    %c0_i32_1 = arith.constant 0 : i32
    return %arg0, %c0_i32, %c0_i32_0 : i32, i32, i32
  }
  func.func @transform_1(%arg0: i32) -> (i32, i32, i32) {
    %c0_i32 = arith.constant 0 : i32
    %c0_i32_0 = arith.constant 0 : i32
    %c0_i32_1 = arith.constant 0 : i32
    %c0_i32_2 = arith.constant 0 : i32
    return %c0_i32, %c0_i32_0, %c0_i32_1 : i32, i32, i32
  }
  func.func @transform_2(%arg0: i32) -> (i32, i32, i32) {
    %c0_i32 = arith.constant 0 : i32
    %c0_i32_0 = arith.constant 0 : i32
    %c0_i32_1 = arith.constant 0 : i32
    %c0_i32_2 = arith.constant 0 : i32
    return %c0_i32, %c0_i32_0, %c0_i32_1 : i32, i32, i32
  }
  func.func @transform_3(%arg0: i32) -> (i32, i32, i32) {
    %c0_i32 = arith.constant 0 : i32
    %c0_i32_0 = arith.constant 0 : i32
    %c0_i32_1 = arith.constant 0 : i32
    return %arg0, %c0_i32, %c0_i32_0 : i32, i32, i32
  }
}

</mosaic_0001>

<bundles_post_ra>
// kernel: tpu_custom_call.1
= control target key start
LH: loop header
LB: loop body
LE: loop exit
PB: predicated region body
PF: predicated region fallthrough
CT: control target
= control target key end

     0   :  { %8 = vsyncpa [#allocation4], 0  ;;  %s2882_s0 = inlined_call_operand.vmem [shape: f32[2,16,64], index: 0, kind: input, shape index: {}]   ;;  %s2883_s1 = inlined_call_operand.vmem [shape: bf16[3,72,64], index: 1, kind: input, shape index: {}]   ;;  %s2884_s2 = inlined_call_operand.vmem [shape: bf16[3,72,64], index: 2, kind: input, shape index: {}]   ;;  %s2885_s3 = inlined_call_operand.hbm [shape: f32[2,16,64], index: 3, kind: output, shape index: {}]  }
   0x1   :  { %10 = vsyncpa [#allocation4 + $0x1], 0  ;;  %s2322_s12 = smov 0   ;;  %s2324_s13 = smov 0  }
   0x2   :  { %s2326_s14 = smov 0   ;;  %s2328_s15 = smov 0  }
   0x3 LB: > { %s2343_s16 = sadd.s32 4294967295, %s2292_s15   ;;  %s1737_s17 = sadd.s32 4294967294, %s2292_s15   ;;  %s2292_s15 = sphi %s2328_s15, %s2918_s15   ;;  %s2288_s14 = sphi %s2326_s14, %s2917_s14   ;;  %s2284_s13 = sphi %s2324_s13, %s2916_s13   ;;  %s2280_s12 = sphi %s2322_s12, %s2915_s12  }
   0x4   : > { %s2347_s18 = sadd.s32 1, %s2292_s15   ;;  %s91_s19 = sadd.s32 1, %s2288_s14 }
   0x5   : > { %s88_s20 = ssub.s32 %s2292_s15, %s2347_s18  ;;  %p101_p0 = scmp.ne.s32.totalorder %s2288_s14, %s2284_s13 }
   0x6   : > { %p89_p1 = scmp.eq.s32.totalorder %s88_s20, 0  ;;  %p102_p2 = scmp.eq.s32.totalorder %s2343_s16, 1 }
   0x7   : > { %p107_p3 = scmp.ne.s32.totalorder %s2284_s13, %s2280_s12  ;;  %p108_p4 = scmp.eq.s32.totalorder %s1737_s17, 1 }
   0x8   : > { %s2358_s21 = scalar_select %p89_p1, %s2288_s14, %s91_s19  }
   0x9   : > { %p2360_p5 = por %p102_p2, %p101_p0  ;;  %p2364_p6 = por %p108_p4, %p107_p3 }
   0xa   : > { %p1740_p7 = scmp.ge.s32.totalorder %s2292_s15, 1  ;;  %p140_p8 = scmp.lt.s32.totalorder %s2292_s15, 3 }
   0xc   : > { %p141_p9 = pnand %p1740_p7, %p140_p8 }
   0xd   : > { %p164_p10 = scmp.lt.s32.totalorder (!%p141_p9), %s2343_s16, 1  ;;  %s2294_s29 = smov (!%p141_p9), 4  }
   0xe   : > { %144 = sbr.rel (%p141_p9) target bundleno = 2912 (0xb60), region = 32  ;;  %s2295_s5 = smov (!%p141_p9), 120  }
   0xf   : > { %s2298_s8 = smov (!%p141_p9), 8   ;;  %s1883_s26 = sshll.u32 (!%p141_p9), %s2343_s16, 8 }
  0x10   : > { %s2833_s4 = scalar_lea.hbm (!%p141_p9), %s2885_s3, %s1883_s26  ;;  %s2300_s7 = smov (!%p141_p9), [#allocation3]  }
  0x11   : > { %s2236_s9 = sshll.u32 (!%p141_p9), %s2300_s7, 4  ;;  %s2237_s9 = int_to_ptr.vmem [resolvable:$false] %s2236_s9 }
  0x12   : > { %s2238_s10 = scalar_lea.vmem (!%p141_p9), %s2237_s9, 512 }
  0x13   : > { %s165_s24 = scalar_select %p164_p10, %s2343_s16, 1  ;;  %vm180_vm0 = vcmask 556064   ;;  %vm183_vm1 = vcmask 549921   ;;  %vm185_vm2 = vcmask 555046   ;;  %v2198_v5 = vld [vmem:[%s2883_s1 + $0x44] ss:$0 sps:$4 sm:$0xff]   ;;  %v491_v44 = vlaneseq }
  0x14   : > { %vm283_vm3 = vcmask 1043456   ;;  %v2296_v6 = vmov 0.0   ;;  %v2199_v7 = vld [vmem:[%s2883_s1 + $0x20] ss:$0 sps:$4 sm:$0xff]   ;;  %v2201_v13 = vld [vmem:[%s2883_s1 + $0x18] sm:$0xff]   ;;  %v2203_v15 = vld [vmem:[%s2883_s1 + $0x10] sm:$0xff]  }
  0x15   : > { %s1882_s25 = sshll.u32 %s165_s24, 4  ;;  %1972 = vmatprep.subr.bf16.mxu0 %v2296_v6  ;;  %v285_v8 = vsel %vm283_vm3, %v2198_v5, 0  ;;  %1986 = vmatprep.subr.bf16.mxu1 %v2296_v6  ;;  %v359_v9 = vsel %vm283_vm3, %v2199_v7, 0  ;;  %v2200_v10 = vld [vmem:[%s2883_s1 + $0x3c] sm:$0xff]   ;;  %v2202_v14 = vld [vmem:[%s2883_s1 + $0x34] sm:$0xff]   ;;  %vm202_vm4 = vcmask 31744  }
  0x16   : > { %s168_s28 = scalar_lea.vmem %s2882_s0, %s1882_s25  ;;  %1973 = vmatpush3.bf16.msra.mxu0 %v285_v8  ;;  %1987 = vmatpush3.bf16.msra.mxu1 %v359_v9  ;;  %v2204_v17 = vld [vmem:[%s2883_s1 + $0x2c] sm:$0xff]   ;;  %vm2297_vm5 = vmmov 0   ;;  %vm2889_vm6 = vcmask 25600   ;;  %v2206_v19 = vld [vmem:[%s2883_s1 + $0x24] sm:$0xff]   ;;  %vm2888_vm7 = vcmask 589344   ;;  %vm2887_vm8 = vcmask 583200  }
  0x17   : > { %v2375_v0 = vld [vmem:[%s168_s28] sm:$0xff]  ;;  %v2377_v1 = vld [vmem:[%s168_s28 + $0x8] sm:$0xff]  ;;  %1974 = vmatprep.subr.bf16.mxu0 %v2296_v6  ;;  %1988 = vmatprep.subr.bf16.mxu1 %v2296_v6  ;;  %vm2886_vm9 = vcmask 588800   ;;  %v2210_v38 = vld [vmem:[%s2883_s1 + $0x58] sm:$0xff]   ;;  %v492_v45 = vshrl.u32 %v491_v44, 7  ;;  %v597_v47 = vand.u32 127, %v491_v44 }
  0x18   : > { %174 = vrot.lane.b32.xlu0 %v2375_v0, %s2294_s29  ;;  %v2205_v18 = vld [vmem:[%s2883_s1 + $0x8] sm:$0xff]   ;;  %1982 = vmatprep.mubr.msk.bf16.mxu0 %vm2297_vm5, %v2296_v6  ;;  %v2207_v20 = vld [vmem:[%s2883_s1] sm:$0xff]   ;;  %v2211_v39 = vld [vmem:[%s2883_s1 + $0x50] sm:$0xff]   ;;  %v2299_v58 = vmov 1.0   ;;  %s161_s24 = sand.u32 1, %s2284_s13  }
  0x19   : > { %1996 = vmatprep.mubr.msk.bf16.mxu1 %vm2297_vm5, %v2296_v6  ;;  %v2208_v29 = vld [vmem:[%s2883_s1 + $0x68] ss:$0 sps:$4 sm:$0xff]   ;;  %v2209_v37 = vld [vmem:[%s2883_s1 + $0x60] sm:$0xff]   ;;  %v499_v46 = vadd.s32 56, %v492_v45  ;;  %v498_v48 = vadd.s32 48, %v492_v45  ;;  %v497_v49 = vadd.s32 40, %v492_v45 }
  0x1a   : > { %1975 = vmatpush3.bf16.msra.mxu0 %v2200_v10  ;;  %1989 = vmatpush3.bf16.msra.mxu1 %v2201_v13  ;;  %v446_v36 = vsel %vm283_vm3, %v2208_v29, 0  ;;  %v2212_v40 = vld [vmem:[%s2883_s1 + $0x48] sm:$0xff]   ;;  %v496_v50 = vadd.s32 32, %v492_v45  ;;  %v495_v53 = vadd.s32 24, %v492_v45  ;;  %v494_v63 = vadd.s32 16, %v492_v45  ;;  %s1741_s25 = sshll.u32 %s161_s24, 4 }
  0x1b   : > { %1976 = vmatprep.subr.bf16.mxu0 %v2296_v6  ;;  %1990 = vmatprep.subr.bf16.mxu1 %v2296_v6  ;;  %v553_v51 = vand.u32 3, %v499_v46  ;;  %v546_v52 = vand.u32 3, %v498_v48  ;;  %v539_v54 = vand.u32 3, %v497_v49  ;;  %v504_v8 = vand.u32 3, %v492_v45  ;;  %s163_s27 = scalar_lea.vmem [#allocation3], %s1741_s25  ;;  %s2841_s16 = scalar_lea.sflag [#allocation4], %s161_s24 }
  0x1c   : > { %176 = vrot.lane.b32.xlu0 %v2377_v1, %s2294_s29  ;;  %v532_v57 = vand.u32 3, %v496_v50  ;;  %v525_v60 = vand.u32 3, %v495_v53  ;;  %v626_v10 = vand.u32 3, %v597_v47  ;;  %s1675_s28 = sshll.u32 %s163_s27, 4  ;;  %s2837_s28 = int_to_ptr.vmem [resolvable:$true] %s1675_s28 }
  0x1d   : > { %vm2471_vm10 = vcmp.eq.s32.totalorder %v553_v51, %v597_v47  ;;  %vm2475_vm11 = vcmp.eq.s32.totalorder %v546_v52, %v597_v47  ;;  %vm2488_vm12 = vcmp.eq.s32.totalorder %v539_v54, %v597_v47  ;;  %s2232_s6 = scalar_lea.vmem %s2837_s28, 256  ;;  %p2239_p0 = scmp.lt.s32.totalorder %s2837_s28, %s2237_s9 }
  0x1e   : > { %1977 = vmatpush3.bf16.msra.mxu0 %v2202_v14  ;;  %1991 = vmatpush3.bf16.msra.mxu1 %v2203_v15  ;;  %vm2504_vm13 = vcmp.eq.s32.totalorder %v532_v57, %v597_v47  ;;  %vm2520_vm14 = vcmp.eq.s32.totalorder %v525_v60, %v597_v47  ;;  %p2233_p11 = scmp.ne.s32.totalorder %s2837_s28, %s2232_s6  ;;  %p2240_p1 = scmp.lt.s32.totalorder %s2238_s10, %s2232_s6 }
  0x1f   : > { %1978 = vmatprep.subr.bf16.mxu0 %v2296_v6  ;;  %1992 = vmatprep.subr.bf16.mxu1 %v2296_v6 }
  0x20   : > { %p2234_p12 = pnand %p2233_p11, %p2360_p5  ;;  %p2241_p2 = por %p2240_p1, %p2239_p0 }
  0x22   : > { %1979 = vmatpush3.bf16.msra.mxu0 %v2204_v17  ;;  %1993 = vmatpush3.bf16.msra.mxu1 %v2205_v18  ;;  %p2235_p13 = pneg %p2234_p12 }
  0x23   : > { %1980 = vmatprep.subr.bf16.mxu0 %v2296_v6  ;;  %1994 = vmatprep.subr.bf16.mxu1 %v2296_v6 }
  0x24   : > { %p2242_p3 = pnand %p2241_p2, %p2235_p13 }
  0x26   : > { %1981 = vmatpush3.bf16.msra.mxu0 %v2206_v19  ;;  %1995 = vmatpush3.bf16.msra.mxu1 %v2207_v20 }
  0x27   : > { %2000 = vmatprep.subr.bf16.mxu0 %v2296_v6  ;;  %2014 = vmatprep.subr.msk.mxu1 %vm2471_vm10, %v2299_v58 }
  0x8a   : > { %v175_v2 = vpop.permute.xlu0 %174 }
  0x8b   : > { %181 = vst.msk [vmem:[#allocation2 + $0x1] sm:$0xff] %vm180_vm0, %v175_v2 }
  0x8c   : > { %184 = vst.msk [vmem:[#allocation2 - $0x1] sm:$0x2] %vm183_vm1, %v175_v2  ;;  %v518_v2 = vand.u32 3, %v494_v63 }
  0x8e   : > { %v177_v3 = vpop.permute.xlu0 %176  ;;  %vm2548_vm15 = vcmp.eq.s32.totalorder %v518_v2, %v597_v47 }
  0x8f   : > { %182 = vst.msk [vmem:[#allocation2 + $0x9] sm:$0xff] %vm180_vm0, %v177_v3 }
  0x90   : > { %186 = vst.msk [vmem:[#allocation2 + $0xb] sm:$0x40] %vm185_vm2, %v177_v3  ;;  %v493_v3 = vadd.s32 8, %v492_v45 }
  0x92   : > { %v511_v5 = vand.u32 3, %v493_v3 }
  0x93   : > { %v187_v4 = vld [vmem:[#allocation2] sm:$0xff] }
  0x94   : > { %193 = vrot.lane.b32.xlu1 %v187_v4, %s2295_s5 }
  0x96   : > { %v188_v12 = vld [vmem:[#allocation2 + $0x8] sm:$0xff] }
  0x97   : > { %v189_v11 = vld [vmem:[#allocation2 + $0x10] sm:$0x3] }
  0x98   : > { %197 = vrot.lane.b32.xlu0 %v189_v11, %s2295_s5  ;;  %195 = vrot.lane.b32.xlu1 %v188_v12, %s2295_s5 }
 0x106   : > { %v194_v16 = vpop.permute.xlu1 %193 }
 0x107   : > { %203 = vst.msk [vmem:[#allocation2] sm:$0xff] %vm202_vm4, %v194_v16 }
 0x10a   : > { %v198_v21 = vpop.permute.xlu0 %197  ;;  %v196_v22 = vpop.permute.xlu1 %195 }
 0x10b   : > { %206 = vst.msk [vmem:[#allocation2 + $0x10] sm:$0x3] %vm2889_vm6, %v198_v21  ;;  %vm637_vm6 = vcmask 523264  }
 0x10c   : > { %204 = vst.msk [vmem:[#allocation2 + $0x8] sm:$0xff] %vm202_vm4, %v196_v22 }
 0x10e   : > { %v207_v23 = vld [vmem:[#allocation2] sm:$0xff] }
 0x10f   : > { %213 = vrot.lane.b32.xlu1 %v207_v23, %s2298_s8 }
 0x112   : > { %v209_v24 = vld [vmem:[#allocation2 + $0x10] sm:$0x3] }
 0x113   : > { %v208_v25 = vld [vmem:[#allocation2 + $0x8] sm:$0xff]  ;;  %217 = vrot.lane.b32.xlu1 %v209_v24, %s2298_s8 }
 0x114   : > { %215 = vrot.lane.b32.xlu0 %v208_v25, %s2298_s8 }
 0x181   : > { %v214_v26 = vpop.permute.xlu1 %213 }
 0x182   : > { %223 = vst.msk [vmem:[#allocation2] sm:$0xff] %vm2888_vm7, %v214_v26 }
 0x185   : > { %v218_v28 = vpop.permute.xlu1 %217 }
 0x186   : > { %v216_v27 = vpop.permute.xlu0 %215  ;;  %226 = vst.msk [vmem:[#allocation2 + $0x10] sm:$0x3] %vm2887_vm8, %v218_v28  ;;  %vm2580_vm8 = vcmp.eq.s32.totalorder %v504_v8, %v597_v47 }
 0x187   : > { %224 = vst.msk [vmem:[#allocation2 + $0x8] sm:$0xff] %vm2888_vm7, %v216_v27  ;;  %vm634_vm7 = vcmp.eq.s32.totalorder %v626_v10, %v492_v45 }
 0x188   : > { %v2601_v11 = vsel %vm634_vm7, 1.0, %v2296_v6  ;;  %vm2911_vm7 = vcmask 583200  }
 0x189   : > { %v227_v30 = vld [vmem:[#allocation2] sm:$0xff] }
 0x18e   : > { %v239_v31 = vld [vmem:[#allocation2 + $0x1] sm:$0xff]  ;;  %v240_v32 = vld [vmem:[#allocation2 + $0x9] sm:$0xff] }
 0x18f   : > { %v228_v33 = vld [vmem:[#allocation2 + $0x8] sm:$0xff]  ;;  %v241_v34 = vpack.c.bf16 %v240_v32, %v239_v31 }
 0x190   : > { %v229_v35 = vpack.c.bf16 %v228_v33, %v227_v30  ;;  %v402_v41 = vld [vmem:[#allocation2 + $0x2] sm:$0xff]  ;;  %v403_v42 = vld [vmem:[#allocation2 + $0xa] sm:$0xff] }
 0x191   : > { %1983 = vmatmul.mubr.msk.bf16.vlgmr.msra.gmra.mxu0 %vm2886_vm9, %v241_v34  ;;  %v404_v43 = vpack.c.bf16 %v403_v42, %v402_v41 }
 0x192   : > { %1997 = vmatmul.mubr.msk.bf16.vlgmr.msra.gmra.mxu1 %vm2886_vm9, %v229_v35  ;;  %2001 = vmatpush3.bf16.msra.mxu0 %v446_v36 }
 0x193   : > { %2010 = vmatprep.mubr.msk.bf16.mxu0 %vm2297_vm5, %v2296_v6  ;;  %2002 = vmatprep.subr.bf16.mxu0 %v2296_v6 }
 0x194   : > { %2015 = vmatpush3.msk.msra.mxu1 %vm2471_vm10, %v2299_v58 }
 0x195   : > { %2016 = vmatprep.subr.msk.mxu1 %vm2475_vm11, %v2299_v58 }
 0x196   : > { %2003 = vmatpush3.bf16.msra.mxu0 %v2209_v37  ;;  %2017 = vmatpush3.msk.msra.mxu1 %vm2475_vm11, %v2299_v58 }
 0x197   : > { %2004 = vmatprep.subr.bf16.mxu0 %v2296_v6  ;;  %2018 = vmatprep.subr.msk.mxu1 %vm2488_vm12, %v2299_v58 }
 0x198   : > { %2019 = vmatpush3.msk.msra.mxu1 %vm2488_vm12, %v2299_v58 }
 0x199   : > { %2020 = vmatprep.subr.msk.mxu1 %vm2504_vm13, %v2299_v58 }
 0x19a   : > { %2005 = vmatpush3.bf16.msra.mxu0 %v2210_v38  ;;  %2021 = vmatpush3.msk.msra.mxu1 %vm2504_vm13, %v2299_v58 }
 0x19b   : > { %2006 = vmatprep.subr.bf16.mxu0 %v2296_v6  ;;  %2022 = vmatprep.subr.msk.mxu1 %vm2520_vm14, %v2299_v58 }
 0x19c   : > { %2023 = vmatpush3.msk.msra.mxu1 %vm2520_vm14, %v2299_v58 }
 0x19d   : > { %2024 = vmatprep.subr.msk.mxu1 %vm2548_vm15, %v2299_v58 }
 0x19e   : > { %2007 = vmatpush3.bf16.msra.mxu0 %v2211_v39  ;;  %2025 = vmatpush3.msk.msra.mxu1 %vm2548_vm15, %v2299_v58 }
 0x19f   : > { %2008 = vmatprep.subr.bf16.mxu0 %v2296_v6 }
 0x1a2   : > { %2009 = vmatpush3.bf16.msra.mxu0 %v2212_v40 }
 0x1a3   : > { %2038 = vmatprep.subr.msk.mxu0 %vm2471_vm10, %v2299_v58 }
 0x1a5   : > { %2011 = vmatmul.mubr.msk.bf16.vlgmr.msra.gmra.mxu0 %vm2886_vm9, %v404_v43  ;;  %vm2564_vm9 = vcmp.eq.s32.totalorder %v511_v5, %v597_v47 }
 0x1a6   : > { %2039 = vmatpush3.msk.msra.mxu0 %vm2471_vm10, %v2299_v58  ;;  %2026 = vmatprep.subr.msk.mxu1 %vm2564_vm9, %v2299_v58 }
 0x1a7   : > { %2040 = vmatprep.subr.msk.mxu0 %vm2475_vm11, %v2299_v58  ;;  %2027 = vmatpush3.msk.msra.mxu1 %vm2564_vm9, %v2299_v58 }
 0x1a8   : > { %2041 = vmatpush3.msk.msra.mxu0 %vm2475_vm11, %v2299_v58  ;;  %2028 = vmatprep.subr.msk.mxu1 %vm2580_vm8, %v2299_v58 }
 0x1a9   : > { %2042 = vmatprep.subr.msk.mxu0 %vm2488_vm12, %v2299_v58  ;;  %2029 = vmatpush3.msk.msra.mxu1 %vm2580_vm8, %v2299_v58 }
 0x1aa   : > { %2043 = vmatpush3.msk.msra.mxu0 %vm2488_vm12, %v2299_v58  ;;  %2033 = vmatprep.subr.msk.mxu1 %vm283_vm3, %v2601_v11 }
 0x1ab   : > { %2044 = vmatprep.subr.msk.mxu0 %vm2504_vm13, %v2299_v58 }
 0x1ac   : > { %2045 = vmatpush3.msk.msra.mxu0 %vm2504_vm13, %v2299_v58 }
 0x1ad   : > { %2046 = vmatprep.subr.msk.mxu0 %vm2520_vm14, %v2299_v58 }
 0x1ae   : > { %2047 = vmatpush3.msk.msra.mxu0 %vm2520_vm14, %v2299_v58 }
 0x1af   : > { %2048 = vmatprep.subr.msk.mxu0 %vm2548_vm15, %v2299_v58 }
 0x1b0   : > { %2049 = vmatpush3.msk.msra.mxu0 %vm2548_vm15, %v2299_v58 }
 0x1b1   : > { %2050 = vmatprep.subr.msk.mxu0 %vm2564_vm9, %v2299_v58 }
 0x1b2   : > { %2051 = vmatpush3.msk.msra.mxu0 %vm2564_vm9, %v2299_v58 }
 0x1b3   : > { %2052 = vmatprep.subr.msk.mxu0 %vm2580_vm8, %v2299_v58 }
 0x1b4   : > { %2053 = vmatpush3.msk.msra.mxu0 %vm2580_vm8, %v2299_v58 }
 0x1b5   : > { %2076 = vmatprep.subr.bf16.mxu0 %v2296_v6 }
 0x251   : > { %v321_v12 = vpop.f32.mrf.mxu0 }
 0x252   : > { %v395_v13 = vpop.f32.mrf.mxu1 }
 0x253   : > { %v1984_v14 = vpop.f32.mrf.mxu0  ;;  %v396_v20 = vadd.f32 %v395_v13, %v321_v12 }
 0x254   : > { %v1998_v15 = vpop.f32.mrf.mxu1 }
 0x255   : > { %v324_v16 = vpop.f32.mrf.mxu0 }
 0x256   : > { %v398_v17 = vpop.f32.mrf.mxu1 }
 0x257   : > { %v1985_v18 = vpop.f32.mrf.mxu0  ;;  %v399_v24 = vadd.f32 %v398_v17, %v324_v16 }
 0x258   : > { %v1999_v19 = vpop.f32.mrf.mxu1 }
 0x259   : > { %v2213_v19 = vld [vmem:[%s2884_s2 + $0x20] ss:$0 sps:$4 sm:$0xff]  }
 0x265   : > { %v482_v21 = vpop.f32.mrf.mxu0 }
 0x266   : > { %v489_v22 = vadd.f32 %v482_v21, %v396_v20  ;;  %v2214_v20 = vld [vmem:[%s2884_s2 + $0x44] ss:$0 sps:$4 sm:$0xff]   ;;  %v1173_v21 = vsel %vm283_vm3, %v2213_v19, 0 }
 0x267   : > { %v2012_v23 = vpop.f32.mrf.mxu0 }
 0x268   : > { %2030 = vmatprep.mubr.msk.f32.mxu1 %vm637_vm6, %v489_v22 }
 0x269   : > { %v485_v25 = vpop.f32.mrf.mxu0 }
 0x26a   : > { %v490_v26 = vadd.f32 %v485_v25, %v399_v24  ;;  %v2215_v24 = vld [vmem:[%s2884_s2 + $0x18] sm:$0xff]  }
 0x26b   : > { %v2013_v27 = vpop.f32.mrf.mxu0  ;;  %v2216_v25 = vld [vmem:[%s2884_s2 + $0x3c] sm:$0xff]  }
 0x26c   : > { %2031 = vmatmul.mubr.msk.f32.vlgmr.msra.gmra.mxu1 %vm637_vm6, %v490_v26  ;;  %v2218_v27 = vld [vmem:[%s2884_s2 + $0x34] sm:$0xff]  }
 0x26d   : > { %2034 = vmatpush3.msk.msra.mxu1 %vm283_vm3, %v2601_v11 }
 0x26e   : > { %2057 = vmatprep.subr.msk.mxu1 %vm283_vm3, %v2601_v11 }
 0x32c   : > { %v2032_v28 = vpop.f32.mrf.mxu1 }
 0x32e   : > { %v710_v29 = vpop.f32.mrf.mxu1 }
 0x32f   : > { %2035 = vmatprep.mubr.msk.f32.mxu1 %vm202_vm4, %v710_v29 }
 0x330   : > { %2036 = vmatmul.mubr.msk.f32.vlgmr.msra.gmra.mxu1 %vm202_vm4, %v2032_v28  ;;  %v2219_v28 = vld [vmem:[%s2884_s2 + $0x8] sm:$0xff]  }
 0x331   : > { %2058 = vmatpush3.msk.msra.mxu1 %vm283_vm3, %v2601_v11 }
 0x332   : > { %2062 = vmatprep.subr.bf16.mxu1 %v2296_v6 }
 0x3f0   : > { %v2037_v30 = vpop.f32.mrf.mxu1 }
 0x3f1   : > { %v804_v32 = vsel %vm637_vm6, %v2037_v30, 0.0 }
 0x3f2   : > { %v794_v31 = vpop.f32.mrf.mxu1 }
 0x3f3   : > { %v803_v33 = vsel %vm637_vm6, %v794_v31, 0.0  ;;  %v2220_v31 = vld [vmem:[%s2884_s2 + $0x2c] sm:$0xff]  }
 0x3f4   : > { %v805_v34 = vadd.f32 %v804_v32, %v803_v33  ;;  %v2221_v32 = vld [vmem:[%s2884_s2] sm:$0xff]  }
 0x3f5   : > { %v2222_v33 = vld [vmem:[%s2884_s2 + $0x24] sm:$0xff]  }
 0x3f6   : > { %v806_v35 = vrot.slane %v805_v34, 4 }
 0x3f8   : > { %v807_v36 = vadd.f32 %v806_v35, %v805_v34 }
 0x3fa   : > { %v808_v37 = vrot.slane %v807_v36, 2 }
 0x3fc   : > { %v809_v38 = vadd.f32 %v808_v37, %v807_v36 }
 0x3fe   : > { %v810_v39 = vrot.slane %v809_v38, 1 }
 0x400   : > { %v811_v40 = vadd.f32 %v810_v39, %v809_v38 }
 0x402   : > { %v812_v41 = vmul.f32 0.00390625, %v811_v40 }
 0x404   : > { %v814_v42 = vsub.f32 %v490_v26, %v812_v41  ;;  %v813_v43 = vsub.f32 %v489_v22, %v812_v41  ;;  %v1099_v22 = vsel %vm283_vm3, %v2214_v20, 0  ;;  %v2217_v26 = vld [vmem:[%s2884_s2 + $0x10] sm:$0xff]  }
 0x406   : > { %v815_v44 = vmul.f32 %v813_v43, %v813_v43  ;;  %v816_v45 = vmul.f32 %v814_v42, %v814_v42 }
 0x408   : > { %2054 = vmatprep.mubr.msk.f32.mxu0 %vm637_vm6, %v815_v44  ;;  %v2223_v44 = vld [vmem:[%s2884_s2 + $0x68] ss:$0 sps:$4 sm:$0xff]  }
 0x409   : > { %2055 = vmatmul.mubr.msk.f32.vlgmr.msra.gmra.mxu0 %vm637_vm6, %v816_v45 }
 0x40a   : > { %2086 = vmatprep.mubr.msk.bf16.mxu0 %vm2297_vm5, %v2296_v6  ;;  %2077 = vmatpush3.bf16.msra.mxu0 %v1173_v21 }
 0x40b   : > { %2078 = vmatprep.subr.bf16.mxu0 %v2296_v6 }
 0x40e   : > { %2079 = vmatpush3.bf16.msra.mxu0 %v2215_v24 }
 0x40f   : > { %2080 = vmatprep.subr.bf16.mxu0 %v2296_v6 }
 0x412   : > { %2081 = vmatpush3.bf16.msra.mxu0 %v2217_v26 }
 0x413   : > { %2082 = vmatprep.subr.bf16.mxu0 %v2296_v6 }
 0x416   : > { %2083 = vmatpush3.bf16.msra.mxu0 %v2219_v28 }
 0x417   : > { %2084 = vmatprep.subr.bf16.mxu0 %v2296_v6 }
 0x41a   : > { %2085 = vmatpush3.bf16.msra.mxu0 %v2221_v32 }
 0x41b   : > { %2104 = vmatprep.subr.msk.mxu0 %vm2471_vm10, %v2299_v58 }
 0x4c9   : > { %v2056_v46 = vpop.f32.mrf.mxu0 }
 0x4cb   : > { %v889_v47 = vpop.f32.mrf.mxu0 }
 0x4cc   : > { %2059 = vmatprep.mubr.msk.f32.mxu1 %vm202_vm4, %v889_v47 }
 0x4cd   : > { %2060 = vmatmul.mubr.msk.f32.vlgmr.msra.gmra.mxu1 %vm202_vm4, %v2056_v46 }
 0x4ce   : > { %2072 = vmatprep.mubr.msk.bf16.mxu1 %vm2297_vm5, %v2296_v6  ;;  %2063 = vmatpush3.bf16.msra.mxu1 %v1099_v22 }
 0x4cf   : > { %2064 = vmatprep.subr.bf16.mxu1 %v2296_v6 }
 0x4d2   : > { %2065 = vmatpush3.bf16.msra.mxu1 %v2216_v25 }
 0x4d3   : > { %2066 = vmatprep.subr.bf16.mxu1 %v2296_v6 }
 0x4d6   : > { %2067 = vmatpush3.bf16.msra.mxu1 %v2218_v27 }
 0x4d7   : > { %2068 = vmatprep.subr.bf16.mxu1 %v2296_v6 }
 0x4da   : > { %2069 = vmatpush3.bf16.msra.mxu1 %v2220_v31 }
 0x4db   : > { %2070 = vmatprep.subr.bf16.mxu1 %v2296_v6 }
 0x4de   : > { %2071 = vmatpush3.bf16.msra.mxu1 %v2222_v33 }
 0x4df   : > { %2090 = vmatprep.subr.bf16.mxu1 %v2296_v6 }
 0x58d   : > { %v2061_v48 = vpop.f32.mrf.mxu1 }
 0x58e   : > { %v980_v50 = vsel %vm637_vm6, %v2061_v48, 0.0  ;;  %v1260_v48 = vsel %vm283_vm3, %v2223_v44, 0 }
 0x58f   : > { %v970_v49 = vpop.f32.mrf.mxu1 }
 0x590   : > { %v979_v51 = vsel %vm637_vm6, %v970_v49, 0.0  ;;  %v2224_v49 = vld [vmem:[%s2884_s2 + $0x60] sm:$0xff]  }
 0x591   : > { %v981_v52 = vadd.f32 %v980_v50, %v979_v51  ;;  %v2225_v50 = vld [vmem:[%s2884_s2 + $0x58] sm:$0xff]   ;;  %v2226_v51 = vld [vmem:[%s2884_s2 + $0x50] sm:$0xff]  }
 0x593   : > { %v982_v53 = vrot.slane %v981_v52, 4 }
 0x595   : > { %v983_v54 = vadd.f32 %v982_v53, %v981_v52  ;;  %v2227_v52 = vld [vmem:[%s2884_s2 + $0x48] sm:$0xff]  }
 0x597   : > { %v984_v57 = vrot.slane %v983_v54, 2 }
 0x599   : > { %v985_v60 = vadd.f32 %v984_v57, %v983_v54 }
 0x59b   : > { %v986_v63 = vrot.slane %v985_v60, 1 }
 0x59d   : > { %v987_v2 = vadd.f32 %v986_v63, %v985_v60 }
 0x59f   : > { %v988_v3 = vmul.f32 0.00390625, %v987_v2 }
 0x5a1   : > { %v989_v5 = vadd.f32 1e-05, %v988_v3 }
 0x5a3   : > { %2228 = vrsqrt.f32 %v989_v5 }
 0x5b0   : > { %v2229_v8 = vpop.eup %2228 }
 0x5b1   : > { %v992_v10 = vmul.f32 %v2229_v8, %v814_v42  ;;  %v991_v12 = vmul.f32 %v2229_v8, %v813_v43 }
 0x5b3   : > { %v994_v13 = vmax.f32 %v992_v10, 0.0  ;;  %v993_v14 = vmax.f32 %v991_v12, 0.0 }
 0x5b5   : > { %999 = vrot.lane.b32.xlu1 %v994_v13, %s2294_s29  ;;  %997 = vrot.lane.b32.xlu0 %v993_v14, %s2294_s29 }
 0x627   : > { %v1000_v15 = vpop.permute.xlu1 %999  ;;  %v998_v16 = vpop.permute.xlu0 %997 }
 0x628   : > { %1004 = vst.msk [vmem:[#allocation2 + $0x9] sm:$0xff] %vm180_vm0, %v1000_v15  ;;  %1003 = vst.msk [vmem:[#allocation2 + $0x1] sm:$0xff] %vm180_vm0, %v998_v16  ;;  %vm2908_vm0 = vcmask 25600  }
 0x629   : > { %1006 = vst.msk [vmem:[#allocation2 + $0xb] sm:$0x40] %vm185_vm2, %v1000_v15 }
 0x62a   : > { %1005 = vst.msk [vmem:[#allocation2 - $0x1] sm:$0x2] %vm183_vm1, %v998_v16  ;;  %vm2909_vm1 = vcmask 589344  }
 0x62b   : > { %vm2910_vm2 = vmmov %vm2909_vm1 }
 0x62f   : > { %v1008_v17 = vld [vmem:[#allocation2 + $0x8] sm:$0xff] }
 0x630   : > { %1015 = vrot.lane.b32.xlu1 %v1008_v17, %s2295_s5  ;;  %v1009_v23 = vld [vmem:[#allocation2 + $0x10] sm:$0x3] }
 0x631   : > { %v1007_v18 = vld [vmem:[#allocation2] sm:$0xff] }
 0x632   : > { %1013 = vrot.lane.b32.xlu0 %v1007_v18, %s2295_s5 }
 0x636   : > { %1017 = vrot.lane.b32.xlu0 %v1009_v23, %s2295_s5 }
 0x6a2   : > { %v1016_v29 = vpop.permute.xlu1 %1015 }
 0x6a3   : > { %1023 = vst.msk [vmem:[#allocation2 + $0x8] sm:$0xff] %vm202_vm4, %v1016_v29 }
 0x6a4   : > { %v1014_v30 = vpop.permute.xlu0 %1013 }
 0x6a5   : > { %1022 = vst.msk [vmem:[#allocation2] sm:$0xff] %vm202_vm4, %v1014_v30 }
 0x6a8   : > { %v1018_v34 = vpop.permute.xlu0 %1017 }
 0x6a9   : > { %1024 = vst.msk [vmem:[#allocation2 + $0x10] sm:$0x3] %vm2908_vm0, %v1018_v34  ;;  %vm2912_vm0 = vcmask 588800  }
 0x6aa   : > { %v1026_v35 = vld [vmem:[#allocation2 + $0x8] sm:$0xff] }
 0x6ab   : > { %1033 = vrot.lane.b32.xlu0 %v1026_v35, %s2298_s8 }
 0x6ac   : > { %v1025_v36 = vld [vmem:[#allocation2] sm:$0xff] }
 0x6ad   : > { %1031 = vrot.lane.b32.xlu1 %v1025_v36, %s2298_s8 }
 0x6b0   : > { %v1027_v37 = vld [vmem:[#allocation2 + $0x10] sm:$0x3] }
 0x6b1   : > { %1035 = vrot.lane.b32.xlu1 %v1027_v37, %s2298_s8 }
 0x71d   : > { %v1034_v39 = vpop.permute.xlu0 %1033 }
 0x71e   : > { %1041 = vst.msk [vmem:[#allocation2 + $0x8] sm:$0xff] %vm2910_vm2, %v1034_v39 }
 0x71f   : > { %v1032_v38 = vpop.permute.xlu1 %1031 }
 0x720   : > { %1040 = vst.msk [vmem:[#allocation2] sm:$0xff] %vm2909_vm1, %v1032_v38  ;;  %vm2913_vm1 = vmmov %vm2912_vm0 }
 0x723   : > { %v1036_v40 = vpop.permute.xlu1 %1035 }
 0x724   : > { %1042 = vst.msk [vmem:[#allocation2 + $0x10] sm:$0x3] %vm2911_vm7, %v1036_v40 }
 0x725   : > { %v1044_v42 = vld [vmem:[#allocation2 + $0x8] sm:$0xff] }
 0x727   : > { %v1043_v41 = vld [vmem:[#allocation2] sm:$0xff] }
 0x728   : > { %v1045_v43 = vpack.c.bf16 %v1044_v42, %v1043_v41  ;;  %v1055_v45 = vld [vmem:[#allocation2 + $0x1] sm:$0xff] }
 0x729   : > { %v1216_v54 = vld [vmem:[#allocation2 + $0x2] sm:$0xff] }
 0x72a   : > { %2087 = vmatmul.mubr.msk.bf16.vlgmr.msra.gmra.mxu0 %vm2912_vm0, %v1045_v43 }
 0x72b   : > { %v1056_v46 = vld [vmem:[#allocation2 + $0x9] sm:$0xff]  ;;  %2105 = vmatpush3.msk.msra.mxu0 %vm2471_vm10, %v2299_v58 }
 0x72c   : > { %v1057_v47 = vpack.c.bf16 %v1056_v46, %v1055_v45  ;;  %2106 = vmatprep.subr.msk.mxu0 %vm2475_vm11, %v2299_v58  ;;  %v1217_v53 = vld [vmem:[#allocation2 + $0xa] sm:$0xff] }
 0x72d   : > { %2107 = vmatpush3.msk.msra.mxu0 %vm2475_vm11, %v2299_v58  ;;  %v1218_v57 = vpack.c.bf16 %v1217_v53, %v1216_v54 }
 0x72e   : > { %2073 = vmatmul.mubr.msk.bf16.vlgmr.msra.gmra.mxu1 %vm2913_vm1, %v1057_v47  ;;  %2108 = vmatprep.subr.msk.mxu0 %vm2488_vm12, %v2299_v58 }
 0x72f   : > { %2091 = vmatpush3.bf16.msra.mxu1 %v1260_v48  ;;  %2100 = vmatprep.mubr.msk.bf16.mxu1 %vm2297_vm5, %v2296_v6  ;;  %vm2914_vm5 = vmmov %vm2912_vm0 }
 0x730   : > { %2092 = vmatprep.subr.bf16.mxu1 %v2296_v6  ;;  %2109 = vmatpush3.msk.msra.mxu0 %vm2488_vm12, %v2299_v58 }
 0x731   : > { %2110 = vmatprep.subr.msk.mxu0 %vm2504_vm13, %v2299_v58 }
 0x732   : > { %2111 = vmatpush3.msk.msra.mxu0 %vm2504_vm13, %v2299_v58 }
 0x733   : > { %2093 = vmatpush3.bf16.msra.mxu1 %v2224_v49  ;;  %2112 = vmatprep.subr.msk.mxu0 %vm2520_vm14, %v2299_v58 }
 0x734   : > { %2094 = vmatprep.subr.bf16.mxu1 %v2296_v6  ;;  %2113 = vmatpush3.msk.msra.mxu0 %vm2520_vm14, %v2299_v58 }
 0x735   : > { %2114 = vmatprep.subr.msk.mxu0 %vm2548_vm15, %v2299_v58 }
 0x736   : > { %2115 = vmatpush3.msk.msra.mxu0 %vm2548_vm15, %v2299_v58 }
 0x737   : > { %2095 = vmatpush3.bf16.msra.mxu1 %v2225_v50  ;;  %2116 = vmatprep.subr.msk.mxu0 %vm2564_vm9, %v2299_v58 }
 0x738   : > { %2096 = vmatprep.subr.bf16.mxu1 %v2296_v6  ;;  %2117 = vmatpush3.msk.msra.mxu0 %vm2564_vm9, %v2299_v58 }
 0x739   : > { %2118 = vmatprep.subr.msk.mxu0 %vm2580_vm8, %v2299_v58 }
 0x73a   : > { %2119 = vmatpush3.msk.msra.mxu0 %vm2580_vm8, %v2299_v58 }
 0x73b   : > { %2097 = vmatpush3.bf16.msra.mxu1 %v2226_v51  ;;  %2128 = vmatprep.subr.msk.mxu0 %vm2471_vm10, %v2299_v58 }
 0x73c   : > { %2098 = vmatprep.subr.bf16.mxu1 %v2296_v6 }
 0x73f   : > { %2099 = vmatpush3.bf16.msra.mxu1 %v2227_v52 }
 0x740   : > { %2123 = vmatprep.subr.msk.mxu1 %vm283_vm3, %v2601_v11 }
 0x742   : > { %2101 = vmatmul.mubr.msk.bf16.vlgmr.msra.gmra.mxu1 %vm2914_vm5, %v1218_v57 }
 0x743   : > { %2124 = vmatpush3.msk.msra.mxu1 %vm283_vm3, %v2601_v11 }
 0x744   : > { %2147 = vmatprep.subr.msk.mxu1 %vm283_vm3, %v2601_v11 }
 0x7ea   : > { %v1209_v60 = vpop.f32.mrf.mxu0 }
 0x7ec   : > { %v2088_v63 = vpop.f32.mrf.mxu0 }
 0x7ee   : > { %v1135_v2 = vpop.f32.mrf.mxu1  ;;  %v1212_v3 = vpop.f32.mrf.mxu0 }
 0x7ef   : > { %v1210_v12 = vadd.f32 %v1209_v60, %v1135_v2 }
 0x7f0   : > { %v2074_v6 = vpop.f32.mrf.mxu1  ;;  %v2089_v5 = vpop.f32.mrf.mxu0 }
 0x7f2   : > { %v1138_v8 = vpop.f32.mrf.mxu1 }
 0x7f3   : > { %v1213_v16 = vadd.f32 %v1212_v3, %v1138_v8 }
 0x7f4   : > { %v2075_v10 = vpop.f32.mrf.mxu1 }
 0x802   : > { %v1296_v13 = vpop.f32.mrf.mxu1 }
 0x803   : > { %v1303_v14 = vadd.f32 %v1296_v13, %v1210_v12 }
 0x804   : > { %v2102_v15 = vpop.f32.mrf.mxu1 }
 0x805   : > { %2120 = vmatprep.mubr.msk.f32.mxu0 %vm637_vm6, %v1303_v14 }
 0x806   : > { %v1299_v17 = vpop.f32.mrf.mxu1 }
 0x807   : > { %v1304_v18 = vadd.f32 %v1299_v17, %v1213_v16 }
 0x808   : > { %v2103_v19 = vpop.f32.mrf.mxu1 }
 0x809   : > { %2121 = vmatmul.mubr.msk.f32.vlgmr.msra.gmra.mxu0 %vm637_vm6, %v1304_v18 }
 0x80a   : > { %2129 = vmatpush3.msk.msra.mxu0 %vm2471_vm10, %v2299_v58 }
 0x80b   : > { %2130 = vmatprep.subr.msk.mxu0 %vm2475_vm11, %v2299_v58 }
 0x80c   : > { %2131 = vmatpush3.msk.msra.mxu0 %vm2475_vm11, %v2299_v58 }
 0x80d   : > { %2132 = vmatprep.subr.msk.mxu0 %vm2488_vm12, %v2299_v58 }
 0x80e   : > { %2133 = vmatpush3.msk.msra.mxu0 %vm2488_vm12, %v2299_v58 }
 0x80f   : > { %2134 = vmatprep.subr.msk.mxu0 %vm2504_vm13, %v2299_v58 }
 0x810   : > { %2135 = vmatpush3.msk.msra.mxu0 %vm2504_vm13, %v2299_v58 }
 0x811   : > { %2136 = vmatprep.subr.msk.mxu0 %vm2520_vm14, %v2299_v58 }
 0x812   : > { %2137 = vmatpush3.msk.msra.mxu0 %vm2520_vm14, %v2299_v58 }
 0x813   : > { %2138 = vmatprep.subr.msk.mxu0 %vm2548_vm15, %v2299_v58 }
 0x814   : > { %2139 = vmatpush3.msk.msra.mxu0 %vm2548_vm15, %v2299_v58 }
 0x815   : > { %2140 = vmatprep.subr.msk.mxu0 %vm2564_vm9, %v2299_v58 }
 0x816   : > { %2141 = vmatpush3.msk.msra.mxu0 %vm2564_vm9, %v2299_v58 }
 0x817   : > { %2142 = vmatprep.subr.msk.mxu0 %vm2580_vm8, %v2299_v58 }
 0x818   : > { %2143 = vmatpush3.msk.msra.mxu0 %vm2580_vm8, %v2299_v58 }
 0x8c9   : > { %v2122_v55 = vpop.f32.mrf.mxu0 }
 0x8cb   : > { %v1377_v56 = vpop.f32.mrf.mxu0 }
 0x8cc   : > { %2125 = vmatprep.mubr.msk.f32.mxu1 %vm202_vm4, %v1377_v56 }
 0x8cd   : > { %2126 = vmatmul.mubr.msk.f32.vlgmr.msra.gmra.mxu1 %vm202_vm4, %v2122_v55 }
 0x8ce   : > { %2148 = vmatpush3.msk.msra.mxu1 %vm283_vm3, %v2601_v11 }
 0x98d   : > { %v2127_v59 = vpop.f32.mrf.mxu1 }
 0x98e   : > { %v1468_v62 = vsel %vm637_vm6, %v2127_v59, 0.0 }
 0x98f   : > { %v1458_v61 = vpop.f32.mrf.mxu1 }
 0x990   : > { %v1467_v4 = vsel %vm637_vm6, %v1458_v61, 0.0 }
 0x991   : > { %v1469_v7 = vadd.f32 %v1468_v62, %v1467_v4 }
 0x993   : > { %v1470_v20 = vrot.slane %v1469_v7, 4 }
 0x995   : > { %v1471_v21 = vadd.f32 %v1470_v20, %v1469_v7 }
 0x997   : > { %v1472_v9 = vrot.slane %v1471_v21, 2 }
 0x999   : > { %v1473_v58 = vadd.f32 %v1472_v9, %v1471_v21 }
 0x99b   : > { %v1474_v22 = vrot.slane %v1473_v58, 1 }
 0x99d   : > { %v1475_v23 = vadd.f32 %v1474_v22, %v1473_v58 }
 0x99f   : > { %v1476_v24 = vmul.f32 0.00390625, %v1475_v23 }
 0x9a1   : > { %v1478_v25 = vsub.f32 %v1304_v18, %v1476_v24  ;;  %v1477_v26 = vsub.f32 %v1303_v14, %v1476_v24 }
 0x9a3   : > { %v1479_v27 = vmul.f32 %v1477_v26, %v1477_v26  ;;  %v1480_v28 = vmul.f32 %v1478_v25, %v1478_v25 }
 0x9a5   : > { %2144 = vmatprep.mubr.msk.f32.mxu0 %vm637_vm6, %v1479_v27 }
 0x9a6   : > { %2145 = vmatmul.mubr.msk.f32.vlgmr.msra.gmra.mxu0 %vm637_vm6, %v1480_v28 }
 0xa66   : > { %v2146_v11 = vpop.f32.mrf.mxu0 }
 0xa68   : > { %v1553_v29 = vpop.f32.mrf.mxu0 }
 0xa69   : > { %2149 = vmatprep.mubr.msk.f32.mxu1 %vm202_vm4, %v1553_v29 }
 0xa6a   : > { %2150 = vmatmul.mubr.msk.f32.vlgmr.msra.gmra.mxu1 %vm202_vm4, %v2146_v11 }
 0xb2a   : > { %v2151_v30 = vpop.f32.mrf.mxu1 }
 0xb2b   : > { %v1644_v32 = vsel %vm637_vm6, %v2151_v30, 0.0 }
 0xb2c   : > { %v1634_v31 = vpop.f32.mrf.mxu1 }
 0xb2d   : > { %v1643_v33 = vsel %vm637_vm6, %v1634_v31, 0.0 }
 0xb2e   : > { %v1645_v34 = vadd.f32 %v1644_v32, %v1643_v33 }
 0xb30   : > { %v1646_v35 = vrot.slane %v1645_v34, 4 }
 0xb32   : > { %v1647_v36 = vadd.f32 %v1646_v35, %v1645_v34 }
 0xb34   : > { %v1648_v37 = vrot.slane %v1647_v36, 2 }
 0xb36   : > { %v1649_v38 = vadd.f32 %v1648_v37, %v1647_v36 }
 0xb38   : > { %v1650_v39 = vrot.slane %v1649_v38, 1 }
 0xb3a   : > { %v1651_v40 = vadd.f32 %v1650_v39, %v1649_v38 }
 0xb3c   : > { %v1652_v41 = vmul.f32 0.00390625, %v1651_v40 }
 0xb3e   : > { %v1653_v42 = vadd.f32 1e-05, %v1652_v41 }
 0xb40   : > { %2230 = vrsqrt.f32 %v1653_v42 }
 0xb4d   : > { %v2231_v43 = vpop.eup %2230 }
 0xb4e   : > { %v1655_v44 = vmul.f32 %v2231_v43, %v1477_v26  ;;  %v1656_v45 = vmul.f32 %v2231_v43, %v1478_v25 }
 0xb50   : > { %v1657_v46 = vadd.f32 %v1655_v44, %v2375_v0  ;;  %v1658_v47 = vadd.f32 %v1656_v45, %v2377_v1 }
 0xb52   : > { %1659 = vst.msk [vmem:[%s163_s27] sm:$0xff] %vm637_vm6, %v1657_v46  ;;  %1660 = vst.msk [vmem:[%s163_s27 + $0x8] sm:$0xff] %vm637_vm6, %v1658_v47 }
 0xb53   : > { %2245 = shalt.err (!%p2242_p3)
}
 0xb54   : > { %s2246_s11 = scalar_lea.hbm %s2833_s4, 256  ;;  %s2250_s20 = scalar_lea.hbm %s2885_s3, 512 }
 0xb55   : > { %p2247_p4 = scmp.ne.s32.totalorder %s2833_s4, %s2246_s11  ;;  %p2251_p9 = scmp.lt.s32.totalorder %s2833_s4, %s2885_s3 }
 0xb56   : > { %p2252_p10 = scmp.lt.s32.totalorder %s2250_s20, %s2246_s11 }
 0xb57   : > { %p2248_p7 = pnand %p2247_p4, %p2360_p5 }
 0xb58   : > { %p2253_p11 = por %p2252_p10, %p2251_p9 }
 0xb59   : > { %p2249_p8 = pneg %p2248_p7 }
 0xb5b   : > { %p2254_p12 = pnand %p2253_p11, %p2249_p8 }
 0xb5d   : > { %2257 = shalt.err (!%p2254_p12)
}
 0xb5e   : > { %s2301_s25 = smov 128  }
 0xb5f   : > { %2152 = dma.vmem_to_hbm [thread:$0]  (%p2360_p5), %s2837_s28, 256, %s2833_s4, %s2841_s16, %s2301_s25, %s2301_s25, %s2298_s8  }
 0xb60 PF: > { %p2158_p13 = scmp.ge.s32.totalorder %s2292_s15, 2  ;;  %s1690_s26 = sand.u32 1, %s2280_s12  }
 0xb61   : > { %s1691_s27 = scalar_lea.sflag [#allocation4], %s1690_s26 }
 0xb62   : > { %p2155_p0 = pnand %p2158_p13, %p2364_p6 }
 0xb64   : > { %p2156_p1 = pneg %p2155_p0 }
 0xb66   : > { %2275 = dma.done.wait (%p2156_p1), %s1691_s27, 256  }
 0xb67   : > { %2277 = vsyncadd (%p2156_p1), %s1691_s27, 4294967040  ;;  %p13_p2 = scmp.ge.s32.totalorder %s2347_s18, 4   ;;  %s2915_s12 = smov %s2284_s13 }
 0xb68   : > { %s2916_s13 = smov %s2288_s14  ;;  %s2917_s14 = smov %s2358_s21 }
 0xb69   : > { %s2918_s15 = smov %s2347_s18  ;;  %15 = sbr.rel (!%p13_p2) target bundleno = 3 (0x3), region = 71 }
 0xb6e   :  { %1696 = vsyncpa [#allocation4], 1 }
 0xb6f   :  { %1698 = vsyncpa [#allocation4 + $0x1], 1 }

// kernel: tpu_custom_call.1
= control target key start
LH: loop header
LB: loop body
LE: loop exit
PB: predicated region body
PF: predicated region fallthrough
CT: control target
= control target key end

     0   :  { %8 = vsyncpa [#allocation4], 0  ;;  %s2882_s0 = inlined_call_operand.vmem [shape: f32[2,16,64], index: 0, kind: input, shape index: {}]   ;;  %s2883_s1 = inlined_call_operand.vmem [shape: bf16[3,72,64], index: 1, kind: input, shape index: {}]   ;;  %s2884_s2 = inlined_call_operand.vmem [shape: bf16[3,72,64], index: 2, kind: input, shape index: {}]   ;;  %s2885_s3 = inlined_call_operand.hbm [shape: f32[2,16,64], index: 3, kind: output, shape index: {}]  }
   0x1   :  { %10 = vsyncpa [#allocation4 + $0x1], 0  ;;  %s2322_s12 = smov 0   ;;  %s2324_s13 = smov 0  }
   0x2   :  { %s2326_s14 = smov 0   ;;  %s2328_s15 = smov 0  }
   0x3 LB: > { %s2343_s16 = sadd.s32 4294967295, %s2292_s15   ;;  %s1737_s17 = sadd.s32 4294967294, %s2292_s15   ;;  %s2292_s15 = sphi %s2328_s15, %s2918_s15   ;;  %s2288_s14 = sphi %s2326_s14, %s2917_s14   ;;  %s2284_s13 = sphi %s2324_s13, %s2916_s13   ;;  %s2280_s12 = sphi %s2322_s12, %s2915_s12  }
   0x4   : > { %s2347_s18 = sadd.s32 1, %s2292_s15   ;;  %s91_s19 = sadd.s32 1, %s2288_s14 }
   0x5   : > { %s88_s20 = ssub.s32 %s2292_s15, %s2347_s18  ;;  %p101_p0 = scmp.ne.s32.totalorder %s2288_s14, %s2284_s13 }
   0x6   : > { %p89_p1 = scmp.eq.s32.totalorder %s88_s20, 0  ;;  %p102_p2 = scmp.eq.s32.totalorder %s2343_s16, 1 }
   0x7   : > { %p107_p3 = scmp.ne.s32.totalorder %s2284_s13, %s2280_s12  ;;  %p108_p4 = scmp.eq.s32.totalorder %s1737_s17, 1 }
   0x8   : > { %s2358_s21 = scalar_select %p89_p1, %s2288_s14, %s91_s19  }
   0x9   : > { %p2360_p5 = por %p102_p2, %p101_p0  ;;  %p2364_p6 = por %p108_p4, %p107_p3 }
   0xa   : > { %p1740_p7 = scmp.ge.s32.totalorder %s2292_s15, 1  ;;  %p140_p8 = scmp.lt.s32.totalorder %s2292_s15, 3 }
   0xc   : > { %p141_p9 = pnand %p1740_p7, %p140_p8 }
   0xd   : > { %p164_p10 = scmp.lt.s32.totalorder (!%p141_p9), %s2343_s16, 1  ;;  %s2294_s29 = smov (!%p141_p9), 4  }
   0xe   : > { %144 = sbr.rel (%p141_p9) target bundleno = 2912 (0xb60), region = 32  ;;  %s2295_s5 = smov (!%p141_p9), 120  }
   0xf   : > { %s2298_s8 = smov (!%p141_p9), 8   ;;  %s1883_s26 = sshll.u32 (!%p141_p9), %s2343_s16, 8 }
  0x10   : > { %s2833_s4 = scalar_lea.hbm (!%p141_p9), %s2885_s3, %s1883_s26  ;;  %s2300_s7 = smov (!%p141_p9), [#allocation3]  }
  0x11   : > { %s2236_s9 = sshll.u32 (!%p141_p9), %s2300_s7, 4  ;;  %s2237_s9 = int_to_ptr.vmem [resolvable:$false] %s2236_s9 }
  0x12   : > { %s2238_s10 = scalar_lea.vmem (!%p141_p9), %s2237_s9, 512 }
  0x13   : > { %s165_s24 = scalar_select %p164_p10, %s2343_s16, 1  ;;  %vm180_vm0 = vcmask 556064   ;;  %vm183_vm1 = vcmask 549921   ;;  %vm185_vm2 = vcmask 555046   ;;  %v2198_v5 = vld [vmem:[%s2883_s1 + $0x44] ss:$0 sps:$4 sm:$0xff]   ;;  %v491_v44 = vlaneseq }
  0x14   : > { %vm283_vm3 = vcmask 1043456   ;;  %v2296_v6 = vmov 0.0   ;;  %v2199_v7 = vld [vmem:[%s2883_s1 + $0x20] ss:$0 sps:$4 sm:$0xff]   ;;  %v2201_v13 = vld [vmem:[%s2883_s1 + $0x18] sm:$0xff]   ;;  %v2203_v15 = vld [vmem:[%s2883_s1 + $0x10] sm:$0xff]  }
  0x15   : > { %s1882_s25 = sshll.u32 %s165_s24, 4  ;;  %1972 = vmatprep.subr.bf16.mxu0 %v2296_v6  ;;  %v285_v8 = vsel %vm283_vm3, %v2198_v5, 0  ;;  %1986 = vmatprep.subr.bf16.mxu1 %v2296_v6  ;;  %v359_v9 = vsel %vm283_vm3, %v2199_v7, 0  ;;  %v2200_v10 = vld [vmem:[%s2883_s1 + $0x3c] sm:$0xff]   ;;  %v2202_v14 = vld [vmem:[%s2883_s1 + $0x34] sm:$0xff]   ;;  %vm202_vm4 = vcmask 31744  }
  0x16   : > { %s168_s28 = scalar_lea.vmem %s2882_s0, %s1882_s25  ;;  %1973 = vmatpush3.bf16.msra.mxu0 %v285_v8  ;;  %1987 = vmatpush3.bf16.msra.mxu1 %v359_v9  ;;  %v2204_v17 = vld [vmem:[%s2883_s1 + $0x2c] sm:$0xff]   ;;  %vm2297_vm5 = vmmov 0   ;;  %vm2889_vm6 = vcmask 25600   ;;  %v2206_v19 = vld [vmem:[%s2883_s1 + $0x24] sm:$0xff]   ;;  %vm2888_vm7 = vcmask 589344   ;;  %vm2887_vm8 = vcmask 583200  }
  0x17   : > { %v2375_v0 = vld [vmem:[%s168_s28] sm:$0xff]  ;;  %v2377_v1 = vld [vmem:[%s168_s28 + $0x8] sm:$0xff]  ;;  %1974 = vmatprep.subr.bf16.mxu0 %v2296_v6  ;;  %1988 = vmatprep.subr.bf16.mxu1 %v2296_v6  ;;  %vm2886_vm9 = vcmask 588800   ;;  %v2210_v38 = vld [vmem:[%s2883_s1 + $0x58] sm:$0xff]   ;;  %v492_v45 = vshrl.u32 %v491_v44, 7  ;;  %v597_v47 = vand.u32 127, %v491_v44 }
  0x18   : > { %174 = vrot.lane.b32.xlu0 %v2375_v0, %s2294_s29  ;;  %v2205_v18 = vld [vmem:[%s2883_s1 + $0x8] sm:$0xff]   ;;  %1982 = vmatprep.mubr.msk.bf16.mxu0 %vm2297_vm5, %v2296_v6  ;;  %v2207_v20 = vld [vmem:[%s2883_s1] sm:$0xff]   ;;  %v2211_v39 = vld [vmem:[%s2883_s1 + $0x50] sm:$0xff]   ;;  %v2299_v58 = vmov 1.0   ;;  %s161_s24 = sand.u32 1, %s2284_s13  }
  0x19   : > { %1996 = vmatprep.mubr.msk.bf16.mxu1 %vm2297_vm5, %v2296_v6  ;;  %v2208_v29 = vld [vmem:[%s2883_s1 + $0x68] ss:$0 sps:$4 sm:$0xff]   ;;  %v2209_v37 = vld [vmem:[%s2883_s1 + $0x60] sm:$0xff]   ;;  %v499_v46 = vadd.s32 56, %v492_v45  ;;  %v498_v48 = vadd.s32 48, %v492_v45  ;;  %v497_v49 = vadd.s32 40, %v492_v45 }
  0x1a   : > { %1975 = vmatpush3.bf16.msra.mxu0 %v2200_v10  ;;  %1989 = vmatpush3.bf16.msra.mxu1 %v2201_v13  ;;  %v446_v36 = vsel %vm283_vm3, %v2208_v29, 0  ;;  %v2212_v40 = vld [vmem:[%s2883_s1 + $0x48] sm:$0xff]   ;;  %v496_v50 = vadd.s32 32, %v492_v45  ;;  %v495_v53 = vadd.s32 24, %v492_v45  ;;  %v494_v63 = vadd.s32 16, %v492_v45  ;;  %s1741_s25 = sshll.u32 %s161_s24, 4 }
  0x1b   : > { %1976 = vmatprep.subr.bf16.mxu0 %v2296_v6  ;;  %1990 = vmatprep.subr.bf16.mxu1 %v2296_v6  ;;  %v553_v51 = vand.u32 3, %v499_v46  ;;  %v546_v52 = vand.u32 3, %v498_v48  ;;  %v539_v54 = vand.u32 3, %v497_v49  ;;  %v504_v8 = vand.u32 3, %v492_v45  ;;  %s163_s27 = scalar_lea.vmem [#allocation3], %s1741_s25  ;;  %s2841_s16 = scalar_lea.sflag [#allocation4], %s161_s24 }
  0x1c   : > { %176 = vrot.lane.b32.xlu0 %v2377_v1, %s2294_s29  ;;  %v532_v57 = vand.u32 3, %v496_v50  ;;  %v525_v60 = vand.u32 3, %v495_v53  ;;  %v626_v10 = vand.u32 3, %v597_v47  ;;  %s1675_s28 = sshll.u32 %s163_s27, 4  ;;  %s2837_s28 = int_to_ptr.vmem [resolvable:$true] %s1675_s28 }
  0x1d   : > { %vm2471_vm10 = vcmp.eq.s32.totalorder %v553_v51, %v597_v47  ;;  %vm2475_vm11 = vcmp.eq.s32.totalorder %v546_v52, %v597_v47  ;;  %vm2488_vm12 = vcmp.eq.s32.totalorder %v539_v54, %v597_v47  ;;  %s2232_s6 = scalar_lea.vmem %s2837_s28, 256  ;;  %p2239_p0 = scmp.lt.s32.totalorder %s2837_s28, %s2237_s9 }
  0x1e   : > { %1977 = vmatpush3.bf16.msra.mxu0 %v2202_v14  ;;  %1991 = vmatpush3.bf16.msra.mxu1 %v2203_v15  ;;  %vm2504_vm13 = vcmp.eq.s32.totalorder %v532_v57, %v597_v47  ;;  %vm2520_vm14 = vcmp.eq.s32.totalorder %v525_v60, %v597_v47  ;;  %p2233_p11 = scmp.ne.s32.totalorder %s2837_s28, %s2232_s6  ;;  %p2240_p1 = scmp.lt.s32.totalorder %s2238_s10, %s2232_s6 }
  0x1f   : > { %1978 = vmatprep.subr.bf16.mxu0 %v2296_v6  ;;  %1992 = vmatprep.subr.bf16.mxu1 %v2296_v6 }
  0x20   : > { %p2234_p12 = pnand %p2233_p11, %p2360_p5  ;;  %p2241_p2 = por %p2240_p1, %p2239_p0 }
  0x22   : > { %1979 = vmatpush3.bf16.msra.mxu0 %v2204_v17  ;;  %1993 = vmatpush3.bf16.msra.mxu1 %v2205_v18  ;;  %p2235_p13 = pneg %p2234_p12 }
  0x23   : > { %1980 = vmatprep.subr.bf16.mxu0 %v2296_v6  ;;  %1994 = vmatprep.subr.bf16.mxu1 %v2296_v6 }
  0x24   : > { %p2242_p3 = pnand %p2241_p2, %p2235_p13 }
  0x26   : > { %1981 = vmatpush3.bf16.msra.mxu0 %v2206_v19  ;;  %1995 = vmatpush3.bf16.msra.mxu1 %v2207_v20 }
  0x27   : > { %2000 = vmatprep.subr.bf16.mxu0 %v2296_v6  ;;  %2014 = vmatprep.subr.msk.mxu1 %vm2471_vm10, %v2299_v58 }
  0x8a   : > { %v175_v2 = vpop.permute.xlu0 %174 }
  0x8b   : > { %181 = vst.msk [vmem:[#allocation2 + $0x1] sm:$0xff] %vm180_vm0, %v175_v2 }
  0x8c   : > { %184 = vst.msk [vmem:[#allocation2 - $0x1] sm:$0x2] %vm183_vm1, %v175_v2  ;;  %v518_v2 = vand.u32 3, %v494_v63 }
  0x8e   : > { %v177_v3 = vpop.permute.xlu0 %176  ;;  %vm2548_vm15 = vcmp.eq.s32.totalorder %v518_v2, %v597_v47 }
  0x8f   : > { %182 = vst.msk [vmem:[#allocation2 + $0x9] sm:$0xff] %vm180_vm0, %v177_v3 }
  0x90   : > { %186 = vst.msk [vmem:[#allocation2 + $0xb] sm:$0x40] %vm185_vm2, %v177_v3  ;;  %v493_v3 = vadd.s32 8, %v492_v45 }
  0x92   : > { %v511_v5 = vand.u32 3, %v493_v3 }
  0x93   : > { %v187_v4 = vld [vmem:[#allocation2] sm:$0xff] }
  0x94   : > { %193 = vrot.lane.b32.xlu1 %v187_v4, %s2295_s5 }
  0x96   : > { %v188_v12 = vld [vmem:[#allocation2 + $0x8] sm:$0xff] }
  0x97   : > { %v189_v11 = vld [vmem:[#allocation2 + $0x10] sm:$0x3] }
  0x98   : > { %197 = vrot.lane.b32.xlu0 %v189_v11, %s2295_s5  ;;  %195 = vrot.lane.b32.xlu1 %v188_v12, %s2295_s5 }
 0x106   : > { %v194_v16 = vpop.permute.xlu1 %193 }
 0x107   : > { %203 = vst.msk [vmem:[#allocation2] sm:$0xff] %vm202_vm4, %v194_v16 }
 0x10a   : > { %v198_v21 = vpop.permute.xlu0 %197  ;;  %v196_v22 = vpop.permute.xlu1 %195 }
 0x10b   : > { %206 = vst.msk [vmem:[#allocation2 + $0x10] sm:$0x3] %vm2889_vm6, %v198_v21  ;;  %vm637_vm6 = vcmask 523264  }
 0x10c   : > { %204 = vst.msk [vmem:[#allocation2 + $0x8] sm:$0xff] %vm202_vm4, %v196_v22 }
 0x10e   : > { %v207_v23 = vld [vmem:[#allocation2] sm:$0xff] }
 0x10f   : > { %213 = vrot.lane.b32.xlu1 %v207_v23, %s2298_s8 }
 0x112   : > { %v209_v24 = vld [vmem:[#allocation2 + $0x10] sm:$0x3] }
 0x113   : > { %v208_v25 = vld [vmem:[#allocation2 + $0x8] sm:$0xff]  ;;  %217 = vrot.lane.b32.xlu1 %v209_v24, %s2298_s8 }
 0x114   : > { %215 = vrot.lane.b32.xlu0 %v208_v25, %s2298_s8 }
 0x181   : > { %v214_v26 = vpop.permute.xlu1 %213 }
 0x182   : > { %223 = vst.msk [vmem:[#allocation2] sm:$0xff] %vm2888_vm7, %v214_v26 }
 0x185   : > { %v218_v28 = vpop.permute.xlu1 %217 }
 0x186   : > { %v216_v27 = vpop.permute.xlu0 %215  ;;  %226 = vst.msk [vmem:[#allocation2 + $0x10] sm:$0x3] %vm2887_vm8, %v218_v28  ;;  %vm2580_vm8 = vcmp.eq.s32.totalorder %v504_v8, %v597_v47 }
 0x187   : > { %224 = vst.msk [vmem:[#allocation2 + $0x8] sm:$0xff] %vm2888_vm7, %v216_v27  ;;  %vm634_vm7 = vcmp.eq.s32.totalorder %v626_v10, %v492_v45 }
 0x188   : > { %v2601_v11 = vsel %vm634_vm7, 1.0, %v2296_v6  ;;  %vm2911_vm7 = vcmask 583200  }
 0x189   : > { %v227_v30 = vld [vmem:[#allocation2] sm:$0xff] }
 0x18e   : > { %v239_v31 = vld [vmem:[#allocation2 + $0x1] sm:$0xff]  ;;  %v240_v32 = vld [vmem:[#allocation2 + $0x9] sm:$0xff] }
 0x18f   : > { %v228_v33 = vld [vmem:[#allocation2 + $0x8] sm:$0xff]  ;;  %v241_v34 = vpack.c.bf16 %v240_v32, %v239_v31 }
 0x190   : > { %v229_v35 = vpack.c.bf16 %v228_v33, %v227_v30  ;;  %v402_v41 = vld [vmem:[#allocation2 + $0x2] sm:$0xff]  ;;  %v403_v42 = vld [vmem:[#allocation2 + $0xa] sm:$0xff] }
 0x191   : > { %1983 = vmatmul.mubr.msk.bf16.vlgmr.msra.gmra.mxu0 %vm2886_vm9, %v241_v34  ;;  %v404_v43 = vpack.c.bf16 %v403_v42, %v402_v41 }
 0x192   : > { %1997 = vmatmul.mubr.msk.bf16.vlgmr.msra.gmra.mxu1 %vm2886_vm9, %v229_v35  ;;  %2001 = vmatpush3.bf16.msra.mxu0 %v446_v36 }
 0x193   : > { %2010 = vmatprep.mubr.msk.bf16.mxu0 %vm2297_vm5, %v2296_v6  ;;  %2002 = vmatprep.subr.bf16.mxu0 %v2296_v6 }
 0x194   : > { %2015 = vmatpush3.msk.msra.mxu1 %vm2471_vm10, %v2299_v58 }
 0x195   : > { %2016 = vmatprep.subr.msk.mxu1 %vm2475_vm11, %v2299_v58 }
 0x196   : > { %2003 = vmatpush3.bf16.msra.mxu0 %v2209_v37  ;;  %2017 = vmatpush3.msk.msra.mxu1 %vm2475_vm11, %v2299_v58 }
 0x197   : > { %2004 = vmatprep.subr.bf16.mxu0 %v2296_v6  ;;  %2018 = vmatprep.subr.msk.mxu1 %vm2488_vm12, %v2299_v58 }
 0x198   : > { %2019 = vmatpush3.msk.msra.mxu1 %vm2488_vm12, %v2299_v58 }
 0x199   : > { %2020 = vmatprep.subr.msk.mxu1 %vm2504_vm13, %v2299_v58 }
 0x19a   : > { %2005 = vmatpush3.bf16.msra.mxu0 %v2210_v38  ;;  %2021 = vmatpush3.msk.msra.mxu1 %vm2504_vm13, %v2299_v58 }
 0x19b   : > { %2006 = vmatprep.subr.bf16.mxu0 %v2296_v6  ;;  %2022 = vmatprep.subr.msk.mxu1 %vm2520_vm14, %v2299_v58 }
 0x19c   : > { %2023 = vmatpush3.msk.msra.mxu1 %vm2520_vm14, %v2299_v58 }
 0x19d   : > { %2024 = vmatprep.subr.msk.mxu1 %vm2548_vm15, %v2299_v58 }
 0x19e   : > { %2007 = vmatpush3.bf16.msra.mxu0 %v2211_v39  ;;  %2025 = vmatpush3.msk.msra.mxu1 %vm2548_vm15, %v2299_v58 }
 0x19f   : > { %2008 = vmatprep.subr.bf16.mxu0 %v2296_v6 }
 0x1a2   : > { %2009 = vmatpush3.bf16.msra.mxu0 %v2212_v40 }
 0x1a3   : > { %2038 = vmatprep.subr.msk.mxu0 %vm2471_vm10, %v2299_v58 }
 0x1a5   : > { %2011 = vmatmul.mubr.msk.bf16.vlgmr.msra.gmra.mxu0 %vm2886_vm9, %v404_v43  ;;  %vm2564_vm9 = vcmp.eq.s32.totalorder %v511_v5, %v597_v47 }
 0x1a6   : > { %2039 = vmatpush3.msk.msra.mxu0 %vm2471_vm10, %v2299_v58  ;;  %2026 = vmatprep.subr.msk.mxu1 %vm2564_vm9, %v2299_v58 }
 0x1a7   : > { %2040 = vmatprep.subr.msk.mxu0 %vm2475_vm11, %v2299_v58  ;;  %2027 = vmatpush3.msk.msra.mxu1 %vm2564_vm9, %v2299_v58 }
 0x1a8   : > { %2041 = vmatpush3.msk.msra.mxu0 %vm2475_vm11, %v2299_v58  ;;  %2028 = vmatprep.subr.msk.mxu1 %vm2580_vm8, %v2299_v58 }
 0x1a9   : > { %2042 = vmatprep.subr.msk.mxu0 %vm2488_vm12, %v2299_v58  ;;  %2029 = vmatpush3.msk.msra.mxu1 %vm2580_vm8, %v2299_v58 }
 0x1aa   : > { %2043 = vmatpush3.msk.msra.mxu0 %vm2488_vm12, %v2299_v58  ;;  %2033 = vmatprep.subr.msk.mxu1 %vm283_vm3, %v2601_v11 }
 0x1ab   : > { %2044 = vmatprep.subr.msk.mxu0 %vm2504_vm13, %v2299_v58 }
 0x1ac   : > { %2045 = vmatpush3.msk.msra.mxu0 %vm2504_vm13, %v2299_v58 }
 0x1ad   : > { %2046 = vmatprep.subr.msk.mxu0 %vm2520_vm14, %v2299_v58 }
 0x1ae   : > { %2047 = vmatpush3.msk.msra.mxu0 %vm2520_vm14, %v2299_v58 }
 0x1af   : > { %2048 = vmatprep.subr.msk.mxu0 %vm2548_vm15, %v2299_v58 }
 0x1b0   : > { %2049 = vmatpush3.msk.msra.mxu0 %vm2548_vm15, %v2299_v58 }
 0x1b1   : > { %2050 = vmatprep.subr.msk.mxu0 %vm2564_vm9, %v2299_v58 }
 0x1b2   : > { %2051 = vmatpush3.msk.msra.mxu0 %vm2564_vm9, %v2299_v58 }
 0x1b3   : > { %2052 = vmatprep.subr.msk.mxu0 %vm2580_vm8, %v2299_v58 }
 0x1b4   : > { %2053 = vmatpush3.msk.msra.mxu0 %vm2580_vm8, %v2299_v58 }
 0x1b5   : > { %2076 = vmatprep.subr.bf16.mxu0 %v2296_v6 }
 0x251   : > { %v321_v12 = vpop.f32.mrf.mxu0 }
 0x252   : > { %v395_v13 = vpop.f32.mrf.mxu1 }
 0x253   : > { %v1984_v14 = vpop.f32.mrf.mxu0  ;;  %v396_v20 = vadd.f32 %v395_v13, %v321_v12 }
 0x254   : > { %v1998_v15 = vpop.f32.mrf.mxu1 }
 0x255   : > { %v324_v16 = vpop.f32.mrf.mxu0 }
 0x256   : > { %v398_v17 = vpop.f32.mrf.mxu1 }
 0x257   : > { %v1985_v18 = vpop.f32.mrf.mxu0  ;;  %v399_v24 = vadd.f32 %v398_v17, %v324_v16 }
 0x258   : > { %v1999_v19 = vpop.f32.mrf.mxu1 }
 0x259   : > { %v2213_v19 = vld [vmem:[%s2884_s2 + $0x20] ss:$0 sps:$4 sm:$0xff]  }
 0x265   : > { %v482_v21 = vpop.f32.mrf.mxu0 }
 0x266   : > { %v489_v22 = vadd.f32 %v482_v21, %v396_v20  ;;  %v2214_v20 = vld [vmem:[%s2884_s2 + $0x44] ss:$0 sps:$4 sm:$0xff]   ;;  %v1173_v21 = vsel %vm283_vm3, %v2213_v19, 0 }
 0x267   : > { %v2012_v23 = vpop.f32.mrf.mxu0 }
 0x268   : > { %2030 = vmatprep.mubr.msk.f32.mxu1 %vm637_vm6, %v489_v22 }
 0x269   : > { %v485_v25 = vpop.f32.mrf.mxu0 }
 0x26a   : > { %v490_v26 = vadd.f32 %v485_v25, %v399_v24  ;;  %v2215_v24 = vld [vmem:[%s2884_s2 + $0x18] sm:$0xff]  }
 0x26b   : > { %v2013_v27 = vpop.f32.mrf.mxu0  ;;  %v2216_v25 = vld [vmem:[%s2884_s2 + $0x3c] sm:$0xff]  }
 0x26c   : > { %2031 = vmatmul.mubr.msk.f32.vlgmr.msra.gmra.mxu1 %vm637_vm6, %v490_v26  ;;  %v2218_v27 = vld [vmem:[%s2884_s2 + $0x34] sm:$0xff]  }
 0x26d   : > { %2034 = vmatpush3.msk.msra.mxu1 %vm283_vm3, %v2601_v11 }
 0x26e   : > { %2057 = vmatprep.subr.msk.mxu1 %vm283_vm3, %v2601_v11 }
 0x32c   : > { %v2032_v28 = vpop.f32.mrf.mxu1 }
 0x32e   : > { %v710_v29 = vpop.f32.mrf.mxu1 }
 0x32f   : > { %2035 = vmatprep.mubr.msk.f32.mxu1 %vm202_vm4, %v710_v29 }
 0x330   : > { %2036 = vmatmul.mubr.msk.f32.vlgmr.msra.gmra.mxu1 %vm202_vm4, %v2032_v28  ;;  %v2219_v28 = vld [vmem:[%s2884_s2 + $0x8] sm:$0xff]  }
 0x331   : > { %2058 = vmatpush3.msk.msra.mxu1 %vm283_vm3, %v2601_v11 }
 0x332   : > { %2062 = vmatprep.subr.bf16.mxu1 %v2296_v6 }
 0x3f0   : > { %v2037_v30 = vpop.f32.mrf.mxu1 }
 0x3f1   : > { %v804_v32 = vsel %vm637_vm6, %v2037_v30, 0.0 }
 0x3f2   : > { %v794_v31 = vpop.f32.mrf.mxu1 }
 0x3f3   : > { %v803_v33 = vsel %vm637_vm6, %v794_v31, 0.0  ;;  %v2220_v31 = vld [vmem:[%s2884_s2 + $0x2c] sm:$0xff]  }
 0x3f4   : > { %v805_v34 = vadd.f32 %v804_v32, %v803_v33  ;;  %v2221_v32 = vld [vmem:[%s2884_s2] sm:$0xff]  }
 0x3f5   : > { %v2222_v33 = vld [vmem:[%s2884_s2 + $0x24] sm:$0xff]  }
 0x3f6   : > { %v806_v35 = vrot.slane %v805_v34, 4 }
 0x3f8   : > { %v807_v36 = vadd.f32 %v806_v35, %v805_v34 }
 0x3fa   : > { %v808_v37 = vrot.slane %v807_v36, 2 }
 0x3fc   : > { %v809_v38 = vadd.f32 %v808_v37, %v807_v36 }
 0x3fe   : > { %v810_v39 = vrot.slane %v809_v38, 1 }
 0x400   : > { %v811_v40 = vadd.f32 %v810_v39, %v809_v38 }
 0x402   : > { %v812_v41 = vmul.f32 0.00390625, %v811_v40 }
 0x404   : > { %v814_v42 = vsub.f32 %v490_v26, %v812_v41  ;;  %v813_v43 = vsub.f32 %v489_v22, %v812_v41  ;;  %v1099_v22 = vsel %vm283_vm3, %v2214_v20, 0  ;;  %v2217_v26 = vld [vmem:[%s2884_s2 + $0x10] sm:$0xff]  }
 0x406   : > { %v815_v44 = vmul.f32 %v813_v43, %v813_v43  ;;  %v816_v45 = vmul.f32 %v814_v42, %v814_v42 }
 0x408   : > { %2054 = vmatprep.mubr.msk.f32.mxu0 %vm637_vm6, %v815_v44  ;;  %v2223_v44 = vld [vmem:[%s2884_s2 + $0x68] ss:$0 sps:$4 sm:$0xff]  }
 0x409   : > { %2055 = vmatmul.mubr.msk.f32.vlgmr.msra.gmra.mxu0 %vm637_vm6, %v816_v45 }
 0x40a   : > { %2086 = vmatprep.mubr.msk.bf16.mxu0 %vm2297_vm5, %v2296_v6  ;;  %2077 = vmatpush3.bf16.msra.mxu0 %v1173_v21 }
 0x40b   : > { %2078 = vmatprep.subr.bf16.mxu0 %v2296_v6 }
 0x40e   : > { %2079 = vmatpush3.bf16.msra.mxu0 %v2215_v24 }
 0x40f   : > { %2080 = vmatprep.subr.bf16.mxu0 %v2296_v6 }
 0x412   : > { %2081 = vmatpush3.bf16.msra.mxu0 %v2217_v26 }
 0x413   : > { %2082 = vmatprep.subr.bf16.mxu0 %v2296_v6 }
 0x416   : > { %2083 = vmatpush3.bf16.msra.mxu0 %v2219_v28 }
 0x417   : > { %2084 = vmatprep.subr.bf16.mxu0 %v2296_v6 }
 0x41a   : > { %2085 = vmatpush3.bf16.msra.mxu0 %v2221_v32 }
 0x41b   : > { %2104 = vmatprep.subr.msk.mxu0 %vm2471_vm10, %v2299_v58 }
 0x4c9   : > { %v2056_v46 = vpop.f32.mrf.mxu0 }
 0x4cb   : > { %v889_v47 = vpop.f32.mrf.mxu0 }
 0x4cc   : > { %2059 = vmatprep.mubr.msk.f32.mxu1 %vm202_vm4, %v889_v47 }
 0x4cd   : > { %2060 = vmatmul.mubr.msk.f32.vlgmr.msra.gmra.mxu1 %vm202_vm4, %v2056_v46 }
 0x4ce   : > { %2072 = vmatprep.mubr.msk.bf16.mxu1 %vm2297_vm5, %v2296_v6  ;;  %2063 = vmatpush3.bf16.msra.mxu1 %v1099_v22 }
 0x4cf   : > { %2064 = vmatprep.subr.bf16.mxu1 %v2296_v6 }
 0x4d2   : > { %2065 = vmatpush3.bf16.msra.mxu1 %v2216_v25 }
 0x4d3   : > { %2066 = vmatprep.subr.bf16.mxu1 %v2296_v6 }
 0x4d6   : > { %2067 = vmatpush3.bf16.msra.mxu1 %v2218_v27 }
 0x4d7   : > { %2068 = vmatprep.subr.bf16.mxu1 %v2296_v6 }
 0x4da   : > { %2069 = vmatpush3.bf16.msra.mxu1 %v2220_v31 }
 0x4db   : > { %2070 = vmatprep.subr.bf16.mxu1 %v2296_v6 }
 0x4de   : > { %2071 = vmatpush3.bf16.msra.mxu1 %v2222_v33 }
 0x4df   : > { %2090 = vmatprep.subr.bf16.mxu1 %v2296_v6 }
 0x58d   : > { %v2061_v48 = vpop.f32.mrf.mxu1 }
 0x58e   : > { %v980_v50 = vsel %vm637_vm6, %v2061_v48, 0.0  ;;  %v1260_v48 = vsel %vm283_vm3, %v2223_v44, 0 }
 0x58f   : > { %v970_v49 = vpop.f32.mrf.mxu1 }
 0x590   : > { %v979_v51 = vsel %vm637_vm6, %v970_v49, 0.0  ;;  %v2224_v49 = vld [vmem:[%s2884_s2 + $0x60] sm:$0xff]  }
 0x591   : > { %v981_v52 = vadd.f32 %v980_v50, %v979_v51  ;;  %v2225_v50 = vld [vmem:[%s2884_s2 + $0x58] sm:$0xff]   ;;  %v2226_v51 = vld [vmem:[%s2884_s2 + $0x50] sm:$0xff]  }
 0x593   : > { %v982_v53 = vrot.slane %v981_v52, 4 }
 0x595   : > { %v983_v54 = vadd.f32 %v982_v53, %v981_v52  ;;  %v2227_v52 = vld [vmem:[%s2884_s2 + $0x48] sm:$0xff]  }
 0x597   : > { %v984_v57 = vrot.slane %v983_v54, 2 }
 0x599   : > { %v985_v60 = vadd.f32 %v984_v57, %v983_v54 }
 0x59b   : > { %v986_v63 = vrot.slane %v985_v60, 1 }
 0x59d   : > { %v987_v2 = vadd.f32 %v986_v63, %v985_v60 }
 0x59f   : > { %v988_v3 = vmul.f32 0.00390625, %v987_v2 }
 0x5a1   : > { %v989_v5 = vadd.f32 1e-05, %v988_v3 }
 0x5a3   : > { %2228 = vrsqrt.f32 %v989_v5 }
 0x5b0   : > { %v2229_v8 = vpop.eup %2228 }
 0x5b1   : > { %v992_v10 = vmul.f32 %v2229_v8, %v814_v42  ;;  %v991_v12 = vmul.f32 %v2229_v8, %v813_v43 }
 0x5b3   : > { %v994_v13 = vmax.f32 %v992_v10, 0.0  ;;  %v993_v14 = vmax.f32 %v991_v12, 0.0 }
 0x5b5   : > { %999 = vrot.lane.b32.xlu1 %v994_v13, %s2294_s29  ;;  %997 = vrot.lane.b32.xlu0 %v993_v14, %s2294_s29 }
 0x627   : > { %v1000_v15 = vpop.permute.xlu1 %999  ;;  %v998_v16 = vpop.permute.xlu0 %997 }
 0x628   : > { %1004 = vst.msk [vmem:[#allocation2 + $0x9] sm:$0xff] %vm180_vm0, %v1000_v15  ;;  %1003 = vst.msk [vmem:[#allocation2 + $0x1] sm:$0xff] %vm180_vm0, %v998_v16  ;;  %vm2908_vm0 = vcmask 25600  }
 0x629   : > { %1006 = vst.msk [vmem:[#allocation2 + $0xb] sm:$0x40] %vm185_vm2, %v1000_v15 }
 0x62a   : > { %1005 = vst.msk [vmem:[#allocation2 - $0x1] sm:$0x2] %vm183_vm1, %v998_v16  ;;  %vm2909_vm1 = vcmask 589344  }
 0x62b   : > { %vm2910_vm2 = vmmov %vm2909_vm1 }
 0x62f   : > { %v1008_v17 = vld [vmem:[#allocation2 + $0x8] sm:$0xff] }
 0x630   : > { %1015 = vrot.lane.b32.xlu1 %v1008_v17, %s2295_s5  ;;  %v1009_v23 = vld [vmem:[#allocation2 + $0x10] sm:$0x3] }
 0x631   : > { %v1007_v18 = vld [vmem:[#allocation2] sm:$0xff] }
 0x632   : > { %1013 = vrot.lane.b32.xlu0 %v1007_v18, %s2295_s5 }
 0x636   : > { %1017 = vrot.lane.b32.xlu0 %v1009_v23, %s2295_s5 }
 0x6a2   : > { %v1016_v29 = vpop.permute.xlu1 %1015 }
 0x6a3   : > { %1023 = vst.msk [vmem:[#allocation2 + $0x8] sm:$0xff] %vm202_vm4, %v1016_v29 }
 0x6a4   : > { %v1014_v30 = vpop.permute.xlu0 %1013 }
 0x6a5   : > { %1022 = vst.msk [vmem:[#allocation2] sm:$0xff] %vm202_vm4, %v1014_v30 }
 0x6a8   : > { %v1018_v34 = vpop.permute.xlu0 %1017 }
 0x6a9   : > { %1024 = vst.msk [vmem:[#allocation2 + $0x10] sm:$0x3] %vm2908_vm0, %v1018_v34  ;;  %vm2912_vm0 = vcmask 588800  }
 0x6aa   : > { %v1026_v35 = vld [vmem:[#allocation2 + $0x8] sm:$0xff] }
 0x6ab   : > { %1033 = vrot.lane.b32.xlu0 %v1026_v35, %s2298_s8 }
 0x6ac   : > { %v1025_v36 = vld [vmem:[#allocation2] sm:$0xff] }
 0x6ad   : > { %1031 = vrot.lane.b32.xlu1 %v1025_v36, %s2298_s8 }
 0x6b0   : > { %v1027_v37 = vld [vmem:[#allocation2 + $0x10] sm:$0x3] }
 0x6b1   : > { %1035 = vrot.lane.b32.xlu1 %v1027_v37, %s2298_s8 }
 0x71d   : > { %v1034_v39 = vpop.permute.xlu0 %1033 }
 0x71e   : > { %1041 = vst.msk [vmem:[#allocation2 + $0x8] sm:$0xff] %vm2910_vm2, %v1034_v39 }
 0x71f   : > { %v1032_v38 = vpop.permute.xlu1 %1031 }
 0x720   : > { %1040 = vst.msk [vmem:[#allocation2] sm:$0xff] %vm2909_vm1, %v1032_v38  ;;  %vm2913_vm1 = vmmov %vm2912_vm0 }
 0x723   : > { %v1036_v40 = vpop.permute.xlu1 %1035 }
 0x724   : > { %1042 = vst.msk [vmem:[#allocation2 + $0x10] sm:$0x3] %vm2911_vm7, %v1036_v40 }
 0x725   : > { %v1044_v42 = vld [vmem:[#allocation2 + $0x8] sm:$0xff] }
 0x727   : > { %v1043_v41 = vld [vmem:[#allocation2] sm:$0xff] }
 0x728   : > { %v1045_v43 = vpack.c.bf16 %v1044_v42, %v1043_v41  ;;  %v1055_v45 = vld [vmem:[#allocation2 + $0x1] sm:$0xff] }
 0x729   : > { %v1216_v54 = vld [vmem:[#allocation2 + $0x2] sm:$0xff] }
 0x72a   : > { %2087 = vmatmul.mubr.msk.bf16.vlgmr.msra.gmra.mxu0 %vm2912_vm0, %v1045_v43 }
 0x72b   : > { %v1056_v46 = vld [vmem:[#allocation2 + $0x9] sm:$0xff]  ;;  %2105 = vmatpush3.msk.msra.mxu0 %vm2471_vm10, %v2299_v58 }
 0x72c   : > { %v1057_v47 = vpack.c.bf16 %v1056_v46, %v1055_v45  ;;  %2106 = vmatprep.subr.msk.mxu0 %vm2475_vm11, %v2299_v58  ;;  %v1217_v53 = vld [vmem:[#allocation2 + $0xa] sm:$0xff] }
 0x72d   : > { %2107 = vmatpush3.msk.msra.mxu0 %vm2475_vm11, %v2299_v58  ;;  %v1218_v57 = vpack.c.bf16 %v1217_v53, %v1216_v54 }
 0x72e   : > { %2073 = vmatmul.mubr.msk.bf16.vlgmr.msra.gmra.mxu1 %vm2913_vm1, %v1057_v47  ;;  %2108 = vmatprep.subr.msk.mxu0 %vm2488_vm12, %v2299_v58 }
 0x72f   : > { %2091 = vmatpush3.bf16.msra.mxu1 %v1260_v48  ;;  %2100 = vmatprep.mubr.msk.bf16.mxu1 %vm2297_vm5, %v2296_v6  ;;  %vm2914_vm5 = vmmov %vm2912_vm0 }
 0x730   : > { %2092 = vmatprep.subr.bf16.mxu1 %v2296_v6  ;;  %2109 = vmatpush3.msk.msra.mxu0 %vm2488_vm12, %v2299_v58 }
 0x731   : > { %2110 = vmatprep.subr.msk.mxu0 %vm2504_vm13, %v2299_v58 }
 0x732   : > { %2111 = vmatpush3.msk.msra.mxu0 %vm2504_vm13, %v2299_v58 }
 0x733   : > { %2093 = vmatpush3.bf16.msra.mxu1 %v2224_v49  ;;  %2112 = vmatprep.subr.msk.mxu0 %vm2520_vm14, %v2299_v58 }
 0x734   : > { %2094 = vmatprep.subr.bf16.mxu1 %v2296_v6  ;;  %2113 = vmatpush3.msk.msra.mxu0 %vm2520_vm14, %v2299_v58 }
 0x735   : > { %2114 = vmatprep.subr.msk.mxu0 %vm2548_vm15, %v2299_v58 }
 0x736   : > { %2115 = vmatpush3.msk.msra.mxu0 %vm2548_vm15, %v2299_v58 }
 0x737   : > { %2095 = vmatpush3.bf16.msra.mxu1 %v2225_v50  ;;  %2116 = vmatprep.subr.msk.mxu0 %vm2564_vm9, %v2299_v58 }
 0x738   : > { %2096 = vmatprep.subr.bf16.mxu1 %v2296_v6  ;;  %2117 = vmatpush3.msk.msra.mxu0 %vm2564_vm9, %v2299_v58 }
 0x739   : > { %2118 = vmatprep.subr.msk.mxu0 %vm2580_vm8, %v2299_v58 }
 0x73a   : > { %2119 = vmatpush3.msk.msra.mxu0 %vm2580_vm8, %v2299_v58 }
 0x73b   : > { %2097 = vmatpush3.bf16.msra.mxu1 %v2226_v51  ;;  %2128 = vmatprep.subr.msk.mxu0 %vm2471_vm10, %v2299_v58 }
 0x73c   : > { %2098 = vmatprep.subr.bf16.mxu1 %v2296_v6 }
 0x73f   : > { %2099 = vmatpush3.bf16.msra.mxu1 %v2227_v52 }
 0x740   : > { %2123 = vmatprep.subr.msk.mxu1 %vm283_vm3, %v2601_v11 }
 0x742   : > { %2101 = vmatmul.mubr.msk.bf16.vlgmr.msra.gmra.mxu1 %vm2914_vm5, %v1218_v57 }
 0x743   : > { %2124 = vmatpush3.msk.msra.mxu1 %vm283_vm3, %v2601_v11 }
 0x744   : > { %2147 = vmatprep.subr.msk.mxu1 %vm283_vm3, %v2601_v11 }
 0x7ea   : > { %v1209_v60 = vpop.f32.mrf.mxu0 }
 0x7ec   : > { %v2088_v63 = vpop.f32.mrf.mxu0 }
 0x7ee   : > { %v1135_v2 = vpop.f32.mrf.mxu1  ;;  %v1212_v3 = vpop.f32.mrf.mxu0 }
 0x7ef   : > { %v1210_v12 = vadd.f32 %v1209_v60, %v1135_v2 }
 0x7f0   : > { %v2074_v6 = vpop.f32.mrf.mxu1  ;;  %v2089_v5 = vpop.f32.mrf.mxu0 }
 0x7f2   : > { %v1138_v8 = vpop.f32.mrf.mxu1 }
 0x7f3   : > { %v1213_v16 = vadd.f32 %v1212_v3, %v1138_v8 }
 0x7f4   : > { %v2075_v10 = vpop.f32.mrf.mxu1 }
 0x802   : > { %v1296_v13 = vpop.f32.mrf.mxu1 }
 0x803   : > { %v1303_v14 = vadd.f32 %v1296_v13, %v1210_v12 }
 0x804   : > { %v2102_v15 = vpop.f32.mrf.mxu1 }
 0x805   : > { %2120 = vmatprep.mubr.msk.f32.mxu0 %vm637_vm6, %v1303_v14 }
 0x806   : > { %v1299_v17 = vpop.f32.mrf.mxu1 }
 0x807   : > { %v1304_v18 = vadd.f32 %v1299_v17, %v1213_v16 }
 0x808   : > { %v2103_v19 = vpop.f32.mrf.mxu1 }
 0x809   : > { %2121 = vmatmul.mubr.msk.f32.vlgmr.msra.gmra.mxu0 %vm637_vm6, %v1304_v18 }
 0x80a   : > { %2129 = vmatpush3.msk.msra.mxu0 %vm2471_vm10, %v2299_v58 }
 0x80b   : > { %2130 = vmatprep.subr.msk.mxu0 %vm2475_vm11, %v2299_v58 }
 0x80c   : > { %2131 = vmatpush3.msk.msra.mxu0 %vm2475_vm11, %v2299_v58 }
 0x80d   : > { %2132 = vmatprep.subr.msk.mxu0 %vm2488_vm12, %v2299_v58 }
 0x80e   : > { %2133 = vmatpush3.msk.msra.mxu0 %vm2488_vm12, %v2299_v58 }
 0x80f   : > { %2134 = vmatprep.subr.msk.mxu0 %vm2504_vm13, %v2299_v58 }
 0x810   : > { %2135 = vmatpush3.msk.msra.mxu0 %vm2504_vm13, %v2299_v58 }
 0x811   : > { %2136 = vmatprep.subr.msk.mxu0 %vm2520_vm14, %v2299_v58 }
 0x812   : > { %2137 = vmatpush3.msk.msra.mxu0 %vm2520_vm14, %v2299_v58 }
 0x813   : > { %2138 = vmatprep.subr.msk.mxu0 %vm2548_vm15, %v2299_v58 }
 0x814   : > { %2139 = vmatpush3.msk.msra.mxu0 %vm2548_vm15, %v2299_v58 }
 0x815   : > { %2140 = vmatprep.subr.msk.mxu0 %vm2564_vm9, %v2299_v58 }
 0x816   : > { %2141 = vmatpush3.msk.msra.mxu0 %vm2564_vm9, %v2299_v58 }
 0x817   : > { %2142 = vmatprep.subr.msk.mxu0 %vm2580_vm8, %v2299_v58 }
 0x818   : > { %2143 = vmatpush3.msk.msra.mxu0 %vm2580_vm8, %v2299_v58 }
 0x8c9   : > { %v2122_v55 = vpop.f32.mrf.mxu0 }
 0x8cb   : > { %v1377_v56 = vpop.f32.mrf.mxu0 }
 0x8cc   : > { %2125 = vmatprep.mubr.msk.f32.mxu1 %vm202_vm4, %v1377_v56 }
 0x8cd   : > { %2126 = vmatmul.mubr.msk.f32.vlgmr.msra.gmra.mxu1 %vm202_vm4, %v2122_v55 }
 0x8ce   : > { %2148 = vmatpush3.msk.msra.mxu1 %vm283_vm3, %v2601_v11 }
 0x98d   : > { %v2127_v59 = vpop.f32.mrf.mxu1 }
 0x98e   : > { %v1468_v62 = vsel %vm637_vm6, %v2127_v59, 0.0 }
 0x98f   : > { %v1458_v61 = vpop.f32.mrf.mxu1 }
 0x990   : > { %v1467_v4 = vsel %vm637_vm6, %v1458_v61, 0.0 }
 0x991   : > { %v1469_v7 = vadd.f32 %v1468_v62, %v1467_v4 }
 0x993   : > { %v1470_v20 = vrot.slane %v1469_v7, 4 }
 0x995   : > { %v1471_v21 = vadd.f32 %v1470_v20, %v1469_v7 }
 0x997   : > { %v1472_v9 = vrot.slane %v1471_v21, 2 }
 0x999   : > { %v1473_v58 = vadd.f32 %v1472_v9, %v1471_v21 }
 0x99b   : > { %v1474_v22 = vrot.slane %v1473_v58, 1 }
 0x99d   : > { %v1475_v23 = vadd.f32 %v1474_v22, %v1473_v58 }
 0x99f   : > { %v1476_v24 = vmul.f32 0.00390625, %v1475_v23 }
 0x9a1   : > { %v1478_v25 = vsub.f32 %v1304_v18, %v1476_v24  ;;  %v1477_v26 = vsub.f32 %v1303_v14, %v1476_v24 }
 0x9a3   : > { %v1479_v27 = vmul.f32 %v1477_v26, %v1477_v26  ;;  %v1480_v28 = vmul.f32 %v1478_v25, %v1478_v25 }
 0x9a5   : > { %2144 = vmatprep.mubr.msk.f32.mxu0 %vm637_vm6, %v1479_v27 }
 0x9a6   : > { %2145 = vmatmul.mubr.msk.f32.vlgmr.msra.gmra.mxu0 %vm637_vm6, %v1480_v28 }
 0xa66   : > { %v2146_v11 = vpop.f32.mrf.mxu0 }
 0xa68   : > { %v1553_v29 = vpop.f32.mrf.mxu0 }
 0xa69   : > { %2149 = vmatprep.mubr.msk.f32.mxu1 %vm202_vm4, %v1553_v29 }
 0xa6a   : > { %2150 = vmatmul.mubr.msk.f32.vlgmr.msra.gmra.mxu1 %vm202_vm4, %v2146_v11 }
 0xb2a   : > { %v2151_v30 = vpop.f32.mrf.mxu1 }
 0xb2b   : > { %v1644_v32 = vsel %vm637_vm6, %v2151_v30, 0.0 }
 0xb2c   : > { %v1634_v31 = vpop.f32.mrf.mxu1 }
 0xb2d   : > { %v1643_v33 = vsel %vm637_vm6, %v1634_v31, 0.0 }
 0xb2e   : > { %v1645_v34 = vadd.f32 %v1644_v32, %v1643_v33 }
 0xb30   : > { %v1646_v35 = vrot.slane %v1645_v34, 4 }
 0xb32   : > { %v1647_v36 = vadd.f32 %v1646_v35, %v1645_v34 }
 0xb34   : > { %v1648_v37 = vrot.slane %v1647_v36, 2 }
 0xb36   : > { %v1649_v38 = vadd.f32 %v1648_v37, %v1647_v36 }
 0xb38   : > { %v1650_v39 = vrot.slane %v1649_v38, 1 }
 0xb3a   : > { %v1651_v40 = vadd.f32 %v1650_v39, %v1649_v38 }
 0xb3c   : > { %v1652_v41 = vmul.f32 0.00390625, %v1651_v40 }
 0xb3e   : > { %v1653_v42 = vadd.f32 1e-05, %v1652_v41 }
 0xb40   : > { %2230 = vrsqrt.f32 %v1653_v42 }
 0xb4d   : > { %v2231_v43 = vpop.eup %2230 }
 0xb4e   : > { %v1655_v44 = vmul.f32 %v2231_v43, %v1477_v26  ;;  %v1656_v45 = vmul.f32 %v2231_v43, %v1478_v25 }
 0xb50   : > { %v1657_v46 = vadd.f32 %v1655_v44, %v2375_v0  ;;  %v1658_v47 = vadd.f32 %v1656_v45, %v2377_v1 }
 0xb52   : > { %1659 = vst.msk [vmem:[%s163_s27] sm:$0xff] %vm637_vm6, %v1657_v46  ;;  %1660 = vst.msk [vmem:[%s163_s27 + $0x8] sm:$0xff] %vm637_vm6, %v1658_v47 }
 0xb53   : > { %2245 = shalt.err (!%p2242_p3)
}
 0xb54   : > { %s2246_s11 = scalar_lea.hbm %s2833_s4, 256  ;;  %s2250_s20 = scalar_lea.hbm %s2885_s3, 512 }
 0xb55   : > { %p2247_p4 = scmp.ne.s32.totalorder %s2833_s4, %s2246_s11  ;;  %p2251_p9 = scmp.lt.s32.totalorder %s2833_s4, %s2885_s3 }
 0xb56   : > { %p2252_p10 = scmp.lt.s32.totalorder %s2250_s20, %s2246_s11 }
 0xb57   : > { %p2248_p7 = pnand %p2247_p4, %p2360_p5 }
 0xb58   : > { %p2253_p11 = por %p2252_p10, %p2251_p9 }
 0xb59   : > { %p2249_p8 = pneg %p2248_p7 }
 0xb5b   : > { %p2254_p12 = pnand %p2253_p11, %p2249_p8 }
 0xb5d   : > { %2257 = shalt.err (!%p2254_p12)
}
 0xb5e   : > { %s2301_s25 = smov 128  }
 0xb5f   : > { %2152 = dma.vmem_to_hbm [thread:$0]  (%p2360_p5), %s2837_s28, 256, %s2833_s4, %s2841_s16, %s2301_s25, %s2301_s25, %s2298_s8  }
 0xb60 PF: > { %p2158_p13 = scmp.ge.s32.totalorder %s2292_s15, 2  ;;  %s1690_s26 = sand.u32 1, %s2280_s12  }
 0xb61   : > { %s1691_s27 = scalar_lea.sflag [#allocation4], %s1690_s26 }
 0xb62   : > { %p2155_p0 = pnand %p2158_p13, %p2364_p6 }
 0xb64   : > { %p2156_p1 = pneg %p2155_p0 }
 0xb66   : > { %2275 = dma.done.wait (%p2156_p1), %s1691_s27, 256  }
 0xb67   : > { %2277 = vsyncadd (%p2156_p1), %s1691_s27, 4294967040  ;;  %p13_p2 = scmp.ge.s32.totalorder %s2347_s18, 4   ;;  %s2915_s12 = smov %s2284_s13 }
 0xb68   : > { %s2916_s13 = smov %s2288_s14  ;;  %s2917_s14 = smov %s2358_s21 }
 0xb69   : > { %s2918_s15 = smov %s2347_s18  ;;  %15 = sbr.rel (!%p13_p2) target bundleno = 3 (0x3), region = 71 }
 0xb6e   :  { %1696 = vsyncpa [#allocation4], 1 }
 0xb6f   :  { %1698 = vsyncpa [#allocation4 + $0x1], 1 }

</bundles_post_ra>
